<compile_context>
chip_gen: v6e
topology: v6e:2x2x1
jax: 0.10.0
libtpu: 0.0.40
codegen_flags: <defaults>
</compile_context>

<pallas_src>
import functools

import jax
import jax.numpy as jnp
from jax.experimental import pallas as pl
from jax.experimental.pallas import tpu as pltpu


def _round_up(x, m):
    return ((x + m - 1) // m) * m


# ---------------------------------------------------------------------------
# One propagation layer, fused:
#   packed_u[:, :D] = R @ x_i          packed_u[:, D:] = (sum_u + R @ x_i) * scale
#   y_i             = R.T @ x_u        (item-side mean update done in the wrapper)
# Grid = (user row blocks i, item column blocks k); k is the inner axis.
# ---------------------------------------------------------------------------
def _layer_kernel(adj_ref, xu_ref, xi_ref, sumu_ref,   # inputs
                  outu_ref, outi_ref,                   # outputs
                  accu_ref,                             # scratch
                  *, scale, tk):
    i = pl.program_id(0)
    k = pl.program_id(1)
    ni = pl.num_programs(0)
    nk = pl.num_programs(1)

    @pl.when(k == 0)
    def _():
        accu_ref[...] = jnp.zeros_like(accu_ref)

    @pl.when(jnp.logical_and(i == 0, k == 0))
    def _():
        outi_ref[...] = jnp.zeros_like(outi_ref)

    a = adj_ref[...]            # (tm, tk) bf16 adjacency tile (streamed once)
    xi = xi_ref[...]            # (tk, D)  bf16
    xu = xu_ref[...]            # (tm, D)  bf16

    # y_u row block: native bf16 x bf16 matmul, f32 accumulation on the MXU.
    accu_ref[...] += jnp.dot(a, xi, preferred_element_type=jnp.float32)

    # y_i contribution for item block k: R.T @ x_u (contract the user/tm dim).
    contrib = jax.lax.dot_general(
        a, xu,
        dimension_numbers=(((0,), (0,)), ((), ())),
        preferred_element_type=jnp.float32,
    )                                                    # (tk, D)
    start = pl.multiple_of(k * tk, tk)
    outi_ref[pl.ds(start, tk), :] = outi_ref[pl.ds(start, tk), :] + contrib

    @pl.when(k == nk - 1)
    def _():
        yu = accu_ref[...]
        su = (sumu_ref[...] + yu) * scale
        # lane-dense (tm, 2*D = 128) packed store
        outu_ref[...] = jnp.concatenate([yu, su], axis=-1).astype(outu_ref.dtype)


def _layer_call(r_ui, x_u, x_i, sum_u, *, scale, tm, tk):
    """One propagation layer on pre-padded, pre-quantized operands."""
    Up, Ip = r_ui.shape
    D = x_u.shape[1]
    grid = (Up // tm, Ip // tk)

    packed_u, y_i = pl.pallas_call(
        functools.partial(_layer_kernel, scale=scale, tk=tk),
        out_shape=(
            jax.ShapeDtypeStruct((Up, 2 * D), jnp.float32),   # [y_u | sum_u_out]
            jax.ShapeDtypeStruct((Ip, D), jnp.float32),        # y_i
        ),
        grid_spec=pltpu.PrefetchScalarGridSpec(
            num_scalar_prefetch=0,
            grid=grid,
            in_specs=[
                pl.BlockSpec((tm, tk), lambda i, k: (i, k)),   # R tile (bf16)
                pl.BlockSpec((tm, D), lambda i, k: (i, 0)),    # x_u rows (bf16)
                pl.BlockSpec((tk, D), lambda i, k: (k, 0)),    # x_i rows (bf16)
                pl.BlockSpec((tm, D), lambda i, k: (i, 0)),    # running user sum (f32)
            ],
            out_specs=[
                pl.BlockSpec((tm, 2 * D), lambda i, k: (i, 0)),
                # Full-resident item accumulator (reduced over the i grid axis;
                # written back to HBM once at the end of the grid). Requires
                # Ip * D * 4 bytes of VMEM -- fine for small/medium item counts.
                pl.BlockSpec((Ip, D), lambda i, k: (0, 0)),
            ],
            scratch_shapes=[pltpu.VMEM((tm, D), jnp.float32)],
        ),
        compiler_params=pltpu.CompilerParams(
            # i cannot be "parallel": the item output accumulates across it.
            dimension_semantics=("arbitrary", "arbitrary"),
        ),
    )(r_ui, x_u, x_i, sum_u)
    return packed_u, y_i


# ---------------------------------------------------------------------------
# PAAC forward (perturbed=False)
# ---------------------------------------------------------------------------
@functools.partial(jax.jit, static_argnames=("layers", "tm", "tk", "adj_dtype"))
def paac_forward(adj, user_emb_weight, item_emb_weight, *, layers,
                 tm=1024, tk=512, adj_dtype=jnp.bfloat16):
    # TODO(synk): perturbed=True random-noise branch (sign(x) * normalize(rand)
    #             * eps) not implemented; the default forward path has no noise.
    # Numerics note: the adjacency and per-layer activations are streamed as
    # bf16 (adj_dtype); accumulation is f32. This diverges from the all-f32
    # PyTorch module by ~bf16 rounding error (validated against the f32
    # reference below). On v7x, adj_dtype could be fp8 for another 2x on the
    # bandwidth-bound adjacency read (verify embedding quality first).
    U, D = user_emb_weight.shape
    I = item_emb_weight.shape[0]

    # Tile clamping: tm multiple of 16 (bf16 sublane packing), tk multiple of 128.
    tm = max(16, min(tm, _round_up(U, 16)))
    tk = max(128, min(tk, _round_up(I, 128)))
    Up, Ip = _round_up(U, tm), _round_up(I, tk)

    # Bipartite + symmetric normalized adjacency: only R = adj[:U, U:] is ever
    # read (R.T is computed from the same tiles). Slice / quantize / pad once,
    # outside the layer loop.
    r_ui = jnp.pad(adj[:U, U:].astype(adj_dtype), ((0, Up - U), (0, Ip - I)))

    x_u = jnp.pad(user_emb_weight, ((0, Up - U), (0, 0))).astype(adj_dtype)
    x_i = jnp.pad(item_emb_weight, ((0, Ip - I), (0, 0))).astype(adj_dtype)
    sum_u = jnp.zeros((Up, D), jnp.float32)
    sum_i = jnp.zeros((Ip, D), jnp.float32)

    for layer in range(layers):
        last = layer == layers - 1
        scale = (1.0 / layers) if last else 1.0
        packed_u, y_i = _layer_call(r_ui, x_u, x_i, sum_u, scale=scale, tm=tm, tk=tk)
        y_u, sum_u = packed_u[:, :D], packed_u[:, D:]
        sum_i = (sum_i + y_i) * scale          # tiny (I, D) elementwise pass
        if not last:
            x_u = y_u.astype(adj_dtype)
            x_i = y_i.astype(adj_dtype)

    return sum_u[:U], sum_i[:I]


# ---------------------------------------------------------------------------
# Synthetic setup: deterministic params + dense normalized bipartite adjacency
# ---------------------------------------------------------------------------
def make_norm_adj(key, num_users, num_items, density=0.05, dtype=jnp.float32):
    """D^{-1/2} A D^{-1/2} for a random bipartite user-item interaction graph."""
    N = num_users + num_items
    r = jax.random.uniform(key, (num_users, num_items))
    inter = (r < density).astype(dtype)
    A = jnp.zeros((N, N), dtype=dtype)
    A = A.at[:num_users, num_users:].set(inter)
    A = A.at[num_users:, :num_users].set(inter.T)
    deg = jnp.maximum(A.sum(axis=1), 1.0)
    d_inv_sqrt = 1.0 / jnp.sqrt(deg)
    return A * d_inv_sqrt[:, None] * d_inv_sqrt[None, :]


if __name__ == "__main__":
    # Small config; intentionally not tile-aligned and with small tiles so the
    # run exercises padding and multi-block accumulation on both grid axes.
    num_users, num_items = 96, 160   # N = 256
    emb_size = 64
    layers = 3

    key = jax.random.PRNGKey(0)
    k_adj, k_u, k_i = jax.random.split(key, 3)

    adj = make_norm_adj(k_adj, num_users, num_items)
    # nn.init.normal_(mean=0, std=0.1) equivalents
    user_w = 0.1 * jax.random.normal(k_u, (num_users, emb_size), dtype=jnp.float32)
    item_w = 0.1 * jax.random.normal(k_i, (num_items, emb_size), dtype=jnp.float32)

    user_emb, item_emb = paac_forward(adj, user_w, item_w, layers=layers,
                                      tm=64, tk=128)
    user_emb = jax.block_until_ready(user_emb)
    item_emb = jax.block_until_ready(item_emb)

    assert user_emb.shape == (num_users, emb_size)
    assert item_emb.shape == (num_items, emb_size)

    # Reference 1: mirrors the kernel's numerics exactly (bf16 adj and bf16
    # activations, f32 accumulation, R.T reused for the item side).
    r = adj[:num_users, num_users:].astype(jnp.bfloat16)
    xu, xi = user_w.astype(jnp.bfloat16), item_w.astype(jnp.bfloat16)
    su = jnp.zeros_like(user_w)
    si = jnp.zeros_like(item_w)
    for _ in range(layers):
        yu = jnp.dot(r, xi, preferred_element_type=jnp.float32)
        yi = jnp.dot(r.T, xu, preferred_element_type=jnp.float32)
        su, si = su + yu, si + yi
        xu, xi = yu.astype(jnp.bfloat16), yi.astype(jnp.bfloat16)
    su, si = su / layers, si / layers
    assert jnp.allclose(user_emb, su, atol=1e-4, rtol=1e-4)
    assert jnp.allclose(item_emb, si, atol=1e-4, rtol=1e-4)

    # Reference 2: module-faithful full-precision dense propagation (the
    # original PyTorch semantics); loose tolerance covers bf16 quantization.
    ego = jnp.concatenate([user_w, item_w], axis=0)
    outs = []
    x = ego
    for _ in range(layers):
        x = adj @ x
        outs.append(x)
    ref = jnp.mean(jnp.stack(outs, axis=1), axis=1)
    assert jnp.allclose(user_emb, ref[:num_users], atol=5e-3, rtol=5e-2)
    assert jnp.allclose(item_emb, ref[num_users:], atol=5e-3, rtol=5e-2)

    print("KERNEL_OK")
</pallas_src>

<mosaic_0001>
module attributes {stable_mosaic.version = 11 : i64} {
  func.func @_layer_kernel(%arg0: i32, %arg1: i32, %arg2: memref<64x128xbf16, #tpu.memory_space<vmem>>, %arg3: memref<64x64xbf16, #tpu.memory_space<vmem>>, %arg4: memref<128x64xbf16, #tpu.memory_space<vmem>>, %arg5: memref<64x64xf32, #tpu.memory_space<vmem>>, %arg6: memref<64x128xf32, #tpu.memory_space<vmem>>, %arg7: memref<256x64xf32, #tpu.memory_space<vmem>>, %arg8: memref<64x64xf32, #tpu.memory_space<vmem>>) attributes {dimension_semantics = [#tpu.dimension_semantics<arbitrary>, #tpu.dimension_semantics<arbitrary>], iteration_bounds = array<i64: 2, 2>, scalar_prefetch = 0 : i64, scratch_operands = 1 : i64, tpu.core_type = #tpu.core_type<tc>, window_params = [{transform_indices = @transform_0, window_bounds = array<i64: 64, 128>}, {transform_indices = @transform_1, window_bounds = array<i64: 64, 64>}, {transform_indices = @transform_2, window_bounds = array<i64: 128, 64>}, {transform_indices = @transform_3, window_bounds = array<i64: 64, 64>}, {transform_indices = @transform_4, window_bounds = array<i64: 64, 128>}, {pipeline_mode = #tpu.pipeline_mode<synchronous>, transform_indices = @transform_5, window_bounds = array<i64: 256, 64>}]} {
    %c0_i32 = arith.constant 0 : i32
    %0 = arith.cmpi eq, %arg1, %c0_i32 : i32
    %1 = arith.extui %0 : i1 to i32
    %c0_i32_0 = arith.constant 0 : i32
    %2 = arith.cmpi ne, %1, %c0_i32_0 : i32
    scf.if %2 {
      %cst_17 = arith.constant 0.000000e+00 : f32
      %26 = vector.broadcast %cst_17 : f32 to vector<64x64xf32>
      %c0_18 = arith.constant 0 : index
      %c0_19 = arith.constant 0 : index
      %27 = vector.load %arg8[%c0_18, %c0_19] : memref<64x64xf32, #tpu.memory_space<vmem>>, vector<64x64xf32>
      tpu.vector_store %arg8[%c0_18, %c0_19], %26 {strides = array<i32>} : memref<64x64xf32, #tpu.memory_space<vmem>>, vector<64x64xf32>,
    } else {
    }
    %c0_i32_1 = arith.constant 0 : i32
    %3 = arith.cmpi eq, %arg0, %c0_i32_1 : i32
    %c0_i32_2 = arith.constant 0 : i32
    %4 = arith.cmpi eq, %arg1, %c0_i32_2 : i32
    %5 = arith.andi %3, %4 : i1
    %6 = arith.extui %5 : i1 to i32
    %c0_i32_3 = arith.constant 0 : i32
    %7 = arith.cmpi ne, %6, %c0_i32_3 : i32
    scf.if %7 {
      %cst_17 = arith.constant 0.000000e+00 : f32
      %26 = vector.broadcast %cst_17 : f32 to vector<256x64xf32>
      %c0_18 = arith.constant 0 : index
      %c0_19 = arith.constant 0 : index
      %27 = vector.load %arg7[%c0_18, %c0_19] : memref<256x64xf32, #tpu.memory_space<vmem>>, vector<256x64xf32>
      tpu.vector_store %arg7[%c0_18, %c0_19], %26 {strides = array<i32>} : memref<256x64xf32, #tpu.memory_space<vmem>>, vector<256x64xf32>,
    } else {
    }
    %c0 = arith.constant 0 : index
    %c0_4 = arith.constant 0 : index
    %8 = vector.load %arg2[%c0, %c0_4] : memref<64x128xbf16, #tpu.memory_space<vmem>>, vector<64x128xbf16>
    %c0_5 = arith.constant 0 : index
    %c0_6 = arith.constant 0 : index
    %9 = vector.load %arg4[%c0_5, %c0_6] : memref<128x64xbf16, #tpu.memory_space<vmem>>, vector<128x64xbf16>
    %c0_7 = arith.constant 0 : index
    %c0_8 = arith.constant 0 : index
    %10 = vector.load %arg3[%c0_7, %c0_8] : memref<64x64xbf16, #tpu.memory_space<vmem>>, vector<64x64xbf16>
    %c0_9 = arith.constant 0 : index
    %c0_10 = arith.constant 0 : index
    %11 = vector.load %arg8[%c0_9, %c0_10] : memref<64x64xf32, #tpu.memory_space<vmem>>, vector<64x64xf32>
    %cst = arith.constant dense<0.000000e+00> : vector<64x64xf32>
    %12 = tpu.matmul %8, %9, %cst {dimension_numbers = #tpu.dot_dimension_numbers<[1], [0], [0], [1], [0, 0, 1, 1], [], []>} : vector<64x128xbf16>, vector<128x64xbf16>, vector<64x64xf32> -> vector<64x64xf32>
    %13 = arith.addf %11, %12 : vector<64x64xf32>
    %c0_11 = arith.constant 0 : index
    %c0_12 = arith.constant 0 : index
    %14 = vector.load %arg8[%c0_11, %c0_12] : memref<64x64xf32, #tpu.memory_space<vmem>>, vector<64x64xf32>
    tpu.vector_store %arg8[%c0_11, %c0_12], %13 {strides = array<i32>} : memref<64x64xf32, #tpu.memory_space<vmem>>, vector<64x64xf32>,
    %cst_13 = arith.constant dense<0.000000e+00> : vector<128x64xf32>
    %15 = tpu.matmul %8, %10, %cst_13 {dimension_numbers = #tpu.dot_dimension_numbers<[0], [0], [1], [1], [0, 1, 1, 1], [], []>} : vector<64x128xbf16>, vector<64x64xbf16>, vector<128x64xf32> -> vector<128x64xf32>
    %c128_i32 = arith.constant 128 : i32
    %16 = arith.muli %arg1, %c128_i32 : i32
    %17 = tpu.assume_multiple %16, 128 : i32
    %18 = arith.index_cast %17 : i32 to index
    %c0_14 = arith.constant 0 : index
    %19 = vector.load %arg7[%18, %c0_14] : memref<256x64xf32, #tpu.memory_space<vmem>>, vector<128x64xf32>
    %20 = arith.addf %19, %15 : vector<128x64xf32>
    %21 = arith.index_cast %17 : i32 to index
    %c0_15 = arith.constant 0 : index
    %22 = vector.load %arg7[%21, %c0_15] : memref<256x64xf32, #tpu.memory_space<vmem>>, vector<128x64xf32>
    tpu.vector_store %arg7[%21, %c0_15], %20 {strides = array<i32>} : memref<256x64xf32, #tpu.memory_space<vmem>>, vector<128x64xf32>,
    %c1_i32 = arith.constant 1 : i32
    %23 = arith.cmpi eq, %arg1, %c1_i32 : i32
    %24 = arith.extui %23 : i1 to i32
    %c0_i32_16 = arith.constant 0 : i32
    %25 = arith.cmpi ne, %24, %c0_i32_16 : i32
    scf.if %25 {
      %c0_17 = arith.constant 0 : index
      %c0_18 = arith.constant 0 : index
      %26 = vector.load %arg8[%c0_17, %c0_18] : memref<64x64xf32, #tpu.memory_space<vmem>>, vector<64x64xf32>
      %c0_19 = arith.constant 0 : index
      %c0_20 = arith.constant 0 : index
      %27 = vector.load %arg5[%c0_19, %c0_20] : memref<64x64xf32, #tpu.memory_space<vmem>>, vector<64x64xf32>
      %28 = arith.addf %27, %26 : vector<64x64xf32>
      %cst_21 = arith.constant 1.000000e+00 : f32
      %29 = vector.broadcast %cst_21 : f32 to vector<64x64xf32>
      %30 = arith.mulf %28, %29 : vector<64x64xf32>
      %31 = tpu.concatenate %26, %30 in 1 : vector<64x64xf32>, vector<64x64xf32> -> vector<64x128xf32>
      %c0_22 = arith.constant 0 : index
      %c0_23 = arith.constant 0 : index
      %32 = vector.load %arg6[%c0_22, %c0_23] : memref<64x128xf32, #tpu.memory_space<vmem>>, vector<64x128xf32>
      tpu.vector_store %arg6[%c0_22, %c0_23], %31 {strides = array<i32>} : memref<64x128xf32, #tpu.memory_space<vmem>>, vector<64x128xf32>,
    } else {
    }
    return
  }
  func.func @transform_0(%arg0: i32, %arg1: i32) -> (i32, i32) {
    %c0_i32 = arith.constant 0 : i32
    return %arg0, %arg1 : i32, i32
  }
  func.func @transform_1(%arg0: i32, %arg1: i32) -> (i32, i32) {
    %c0_i32 = arith.constant 0 : i32
    %c0_i32_0 = arith.constant 0 : i32
    return %arg0, %c0_i32 : i32, i32
  }
  func.func @transform_2(%arg0: i32, %arg1: i32) -> (i32, i32) {
    %c0_i32 = arith.constant 0 : i32
    %c0_i32_0 = arith.constant 0 : i32
    return %arg1, %c0_i32 : i32, i32
  }
  func.func @transform_3(%arg0: i32, %arg1: i32) -> (i32, i32) {
    %c0_i32 = arith.constant 0 : i32
    %c0_i32_0 = arith.constant 0 : i32
    return %arg0, %c0_i32 : i32, i32
  }
  func.func @transform_4(%arg0: i32, %arg1: i32) -> (i32, i32) {
    %c0_i32 = arith.constant 0 : i32
    %c0_i32_0 = arith.constant 0 : i32
    return %arg0, %c0_i32 : i32, i32
  }
  func.func @transform_5(%arg0: i32, %arg1: i32) -> (i32, i32) {
    %c0_i32 = arith.constant 0 : i32
    %c0_i32_0 = arith.constant 0 : i32
    %c0_i32_1 = arith.constant 0 : i32
    return %c0_i32, %c0_i32_0 : i32, i32
  }
}

module attributes {stable_mosaic.version = 11 : i64} {
  func.func @_layer_kernel(%arg0: i32, %arg1: i32, %arg2: memref<64x128xbf16, #tpu.memory_space<vmem>>, %arg3: memref<64x64xbf16, #tpu.memory_space<vmem>>, %arg4: memref<128x64xbf16, #tpu.memory_space<vmem>>, %arg5: memref<64x64xf32, #tpu.memory_space<vmem>>, %arg6: memref<64x128xf32, #tpu.memory_space<vmem>>, %arg7: memref<256x64xf32, #tpu.memory_space<vmem>>, %arg8: memref<64x64xf32, #tpu.memory_space<vmem>>) attributes {dimension_semantics = [#tpu.dimension_semantics<arbitrary>, #tpu.dimension_semantics<arbitrary>], iteration_bounds = array<i64: 2, 2>, scalar_prefetch = 0 : i64, scratch_operands = 1 : i64, tpu.core_type = #tpu.core_type<tc>, window_params = [{transform_indices = @transform_0, window_bounds = array<i64: 64, 128>}, {transform_indices = @transform_1, window_bounds = array<i64: 64, 64>}, {transform_indices = @transform_2, window_bounds = array<i64: 128, 64>}, {transform_indices = @transform_3, window_bounds = array<i64: 64, 64>}, {transform_indices = @transform_4, window_bounds = array<i64: 64, 128>}, {pipeline_mode = #tpu.pipeline_mode<synchronous>, transform_indices = @transform_5, window_bounds = array<i64: 256, 64>}]} {
    %c0_i32 = arith.constant 0 : i32
    %0 = arith.cmpi eq, %arg1, %c0_i32 : i32
    %1 = arith.extui %0 : i1 to i32
    %c0_i32_0 = arith.constant 0 : i32
    %2 = arith.cmpi ne, %1, %c0_i32_0 : i32
    scf.if %2 {
      %cst_17 = arith.constant 0.000000e+00 : f32
      %26 = vector.broadcast %cst_17 : f32 to vector<64x64xf32>
      %c0_18 = arith.constant 0 : index
      %c0_19 = arith.constant 0 : index
      %27 = vector.load %arg8[%c0_18, %c0_19] : memref<64x64xf32, #tpu.memory_space<vmem>>, vector<64x64xf32>
      tpu.vector_store %arg8[%c0_18, %c0_19], %26 {strides = array<i32>} : memref<64x64xf32, #tpu.memory_space<vmem>>, vector<64x64xf32>,
    } else {
    }
    %c0_i32_1 = arith.constant 0 : i32
    %3 = arith.cmpi eq, %arg0, %c0_i32_1 : i32
    %c0_i32_2 = arith.constant 0 : i32
    %4 = arith.cmpi eq, %arg1, %c0_i32_2 : i32
    %5 = arith.andi %3, %4 : i1
    %6 = arith.extui %5 : i1 to i32
    %c0_i32_3 = arith.constant 0 : i32
    %7 = arith.cmpi ne, %6, %c0_i32_3 : i32
    scf.if %7 {
      %cst_17 = arith.constant 0.000000e+00 : f32
      %26 = vector.broadcast %cst_17 : f32 to vector<256x64xf32>
      %c0_18 = arith.constant 0 : index
      %c0_19 = arith.constant 0 : index
      %27 = vector.load %arg7[%c0_18, %c0_19] : memref<256x64xf32, #tpu.memory_space<vmem>>, vector<256x64xf32>
      tpu.vector_store %arg7[%c0_18, %c0_19], %26 {strides = array<i32>} : memref<256x64xf32, #tpu.memory_space<vmem>>, vector<256x64xf32>,
    } else {
    }
    %c0 = arith.constant 0 : index
    %c0_4 = arith.constant 0 : index
    %8 = vector.load %arg2[%c0, %c0_4] : memref<64x128xbf16, #tpu.memory_space<vmem>>, vector<64x128xbf16>
    %c0_5 = arith.constant 0 : index
    %c0_6 = arith.constant 0 : index
    %9 = vector.load %arg4[%c0_5, %c0_6] : memref<128x64xbf16, #tpu.memory_space<vmem>>, vector<128x64xbf16>
    %c0_7 = arith.constant 0 : index
    %c0_8 = arith.constant 0 : index
    %10 = vector.load %arg3[%c0_7, %c0_8] : memref<64x64xbf16, #tpu.memory_space<vmem>>, vector<64x64xbf16>
    %c0_9 = arith.constant 0 : index
    %c0_10 = arith.constant 0 : index
    %11 = vector.load %arg8[%c0_9, %c0_10] : memref<64x64xf32, #tpu.memory_space<vmem>>, vector<64x64xf32>
    %cst = arith.constant dense<0.000000e+00> : vector<64x64xf32>
    %12 = tpu.matmul %8, %9, %cst {dimension_numbers = #tpu.dot_dimension_numbers<[1], [0], [0], [1], [0, 0, 1, 1], [], []>} : vector<64x128xbf16>, vector<128x64xbf16>, vector<64x64xf32> -> vector<64x64xf32>
    %13 = arith.addf %11, %12 : vector<64x64xf32>
    %c0_11 = arith.constant 0 : index
    %c0_12 = arith.constant 0 : index
    %14 = vector.load %arg8[%c0_11, %c0_12] : memref<64x64xf32, #tpu.memory_space<vmem>>, vector<64x64xf32>
    tpu.vector_store %arg8[%c0_11, %c0_12], %13 {strides = array<i32>} : memref<64x64xf32, #tpu.memory_space<vmem>>, vector<64x64xf32>,
    %cst_13 = arith.constant dense<0.000000e+00> : vector<128x64xf32>
    %15 = tpu.matmul %8, %10, %cst_13 {dimension_numbers = #tpu.dot_dimension_numbers<[0], [0], [1], [1], [0, 1, 1, 1], [], []>} : vector<64x128xbf16>, vector<64x64xbf16>, vector<128x64xf32> -> vector<128x64xf32>
    %c128_i32 = arith.constant 128 : i32
    %16 = arith.muli %arg1, %c128_i32 : i32
    %17 = tpu.assume_multiple %16, 128 : i32
    %18 = arith.index_cast %17 : i32 to index
    %c0_14 = arith.constant 0 : index
    %19 = vector.load %arg7[%18, %c0_14] : memref<256x64xf32, #tpu.memory_space<vmem>>, vector<128x64xf32>
    %20 = arith.addf %19, %15 : vector<128x64xf32>
    %21 = arith.index_cast %17 : i32 to index
    %c0_15 = arith.constant 0 : index
    %22 = vector.load %arg7[%21, %c0_15] : memref<256x64xf32, #tpu.memory_space<vmem>>, vector<128x64xf32>
    tpu.vector_store %arg7[%21, %c0_15], %20 {strides = array<i32>} : memref<256x64xf32, #tpu.memory_space<vmem>>, vector<128x64xf32>,
    %c1_i32 = arith.constant 1 : i32
    %23 = arith.cmpi eq, %arg1, %c1_i32 : i32
    %24 = arith.extui %23 : i1 to i32
    %c0_i32_16 = arith.constant 0 : i32
    %25 = arith.cmpi ne, %24, %c0_i32_16 : i32
    scf.if %25 {
      %c0_17 = arith.constant 0 : index
      %c0_18 = arith.constant 0 : index
      %26 = vector.load %arg8[%c0_17, %c0_18] : memref<64x64xf32, #tpu.memory_space<vmem>>, vector<64x64xf32>
      %c0_19 = arith.constant 0 : index
      %c0_20 = arith.constant 0 : index
      %27 = vector.load %arg5[%c0_19, %c0_20] : memref<64x64xf32, #tpu.memory_space<vmem>>, vector<64x64xf32>
      %28 = arith.addf %27, %26 : vector<64x64xf32>
      %cst_21 = arith.constant 0.333333343 : f32
      %29 = vector.broadcast %cst_21 : f32 to vector<64x64xf32>
      %30 = arith.mulf %28, %29 : vector<64x64xf32>
      %31 = tpu.concatenate %26, %30 in 1 : vector<64x64xf32>, vector<64x64xf32> -> vector<64x128xf32>
      %c0_22 = arith.constant 0 : index
      %c0_23 = arith.constant 0 : index
      %32 = vector.load %arg6[%c0_22, %c0_23] : memref<64x128xf32, #tpu.memory_space<vmem>>, vector<64x128xf32>
      tpu.vector_store %arg6[%c0_22, %c0_23], %31 {strides = array<i32>} : memref<64x128xf32, #tpu.memory_space<vmem>>, vector<64x128xf32>,
    } else {
    }
    return
  }
  func.func @transform_0(%arg0: i32, %arg1: i32) -> (i32, i32) {
    %c0_i32 = arith.constant 0 : i32
    return %arg0, %arg1 : i32, i32
  }
  func.func @transform_1(%arg0: i32, %arg1: i32) -> (i32, i32) {
    %c0_i32 = arith.constant 0 : i32
    %c0_i32_0 = arith.constant 0 : i32
    return %arg0, %c0_i32 : i32, i32
  }
  func.func @transform_2(%arg0: i32, %arg1: i32) -> (i32, i32) {
    %c0_i32 = arith.constant 0 : i32
    %c0_i32_0 = arith.constant 0 : i32
    return %arg1, %c0_i32 : i32, i32
  }
  func.func @transform_3(%arg0: i32, %arg1: i32) -> (i32, i32) {
    %c0_i32 = arith.constant 0 : i32
    %c0_i32_0 = arith.constant 0 : i32
    return %arg0, %c0_i32 : i32, i32
  }
  func.func @transform_4(%arg0: i32, %arg1: i32) -> (i32, i32) {
    %c0_i32 = arith.constant 0 : i32
    %c0_i32_0 = arith.constant 0 : i32
    return %arg0, %c0_i32 : i32, i32
  }
  func.func @transform_5(%arg0: i32, %arg1: i32) -> (i32, i32) {
    %c0_i32 = arith.constant 0 : i32
    %c0_i32_0 = arith.constant 0 : i32
    %c0_i32_1 = arith.constant 0 : i32
    return %c0_i32, %c0_i32_0 : i32, i32
  }
}

</mosaic_0001>

<bundles_post_ra>
// kernel: paac_forward.3
= control target key start
LH: loop header
LB: loop body
LE: loop exit
PB: predicated region body
PF: predicated region fallthrough
CT: control target
= control target key end

     0   :  { %s1669_s0 = inlined_call_operand.vmem [shape: bf16[128,256], index: 0, kind: input, shape index: {}]   ;;  %s1670_s1 = inlined_call_operand.vmem [shape: bf16[128,64], index: 1, kind: input, shape index: {}]   ;;  %s1671_s2 = inlined_call_operand.vmem [shape: bf16[256,64], index: 2, kind: input, shape index: {}]   ;;  %s1672_s3 = inlined_call_operand.vmem [shape: f32[128,64], index: 3, kind: input, shape index: {}]   ;;  %s1673_s4 = inlined_call_operand.vmem [shape: f32[128,128], index: 4, kind: output, shape index: {0}]   ;;  %s1674_s5 = inlined_call_operand.vmem [shape: f32[256,64], index: 5, kind: output, shape index: {1}]  }
   0x1   :  { %1675 = sst [smem:[#allocation4_spill]] %s1669_s0 }
   0x2   :  { %s1317_s18 = smov 0   ;;  %s1319_s19 = smov 0  }
   0x3   :  { %s1321_s20 = smov 0   ;;  %s1323_s21 = smov 0  }
   0x4   :  { %s1325_s22 = smov 0   ;;  %s1327_s23 = smov 0  }
   0x5   :  { %s1329_s24 = smov 0  }
   0x6 LB: > { %s25_s25 = sadd.s32 1, %s1274_s22  ;;  %s28_s26 = sadd.s32 1, %s1278_s23  ;;  %s1282_s24 = sphi %s1329_s24, %s16_s24   ;;  %s1278_s23 = sphi %s1327_s23, %s1682_s23   ;;  %s1274_s22 = sphi %s1325_s22, %s1681_s22   ;;  %s1270_s21 = sphi %s1323_s21, %s1680_s21   ;;  %s1266_s20 = sphi %s1321_s20, %s1679_s20   ;;  %s1262_s19 = sphi %s1319_s19, %s1678_s19   ;;  %s1258_s18 = sphi %s1317_s18, %s1677_s18  }
   0x7   : > { %p26_p0 = scmp.ge.s32.totalorder %s25_s25, 2  ;;  %p44_p1 = scmp.ne.s32.totalorder %s1262_s19, %s1258_s18 }
   0x8   : > { %p45_p2 = scmp.eq.s32.totalorder %s1282_s24, 0  ;;  %s37_s30 = sadd.s32 1, %s1262_s19 }
   0x9   : > { %s1684_s25 = smov (%p26_p0, %s25_s25), 0  ;;  %s1686_s26 = smov (!%p26_p0, %s28_s26), %s1278_s23 }
   0xa   : > { %p46_p3 = por %p45_p2, %p44_p1  ;;  %p30_p4 = scmp.ge.s32.totalorder %s1686_s26, 2 }
   0xb   : > { %s33_s27 = ssub.s32 %s1274_s22, %s1684_s25  ;;  %p1035_p6 = scmp.ge.s32.totalorder %s1282_s24, 4 }
   0xc   : > { %s1688_s26 = smov (%p30_p4, %s1686_s26), 0 }
   0xd   : > { %s32_s28 = ssub.s32 %s1278_s23, %s1688_s26  ;;  %195 = sbr.rel (%p1035_p6) target bundleno = 33 (0x21), region = 16 }
   0xe   : > { %s34_s29 = sor.u32 %s33_s27, %s32_s28 }
   0xf   : > { %p35_p5 = scmp.eq.s32.totalorder %s34_s29, 0 }
  0x11   : > { %s1368_s6 = scalar_select %p35_p5, %s1262_s19, %s37_s30  }
  0x12   : > { %198 = sbr.rel (!%p46_p3) target bundleno = 33 (0x21), region = 20  ;;  %s200_s7 = sand.u32 (%p46_p3), 1, %s1262_s19  }
  0x13   : > { %s1079_s8 = sshll.u32 (%p46_p3), %s1278_s23, 4  ;;  %s1036_s9 = sshll.u32 (%p46_p3), %s200_s7, 5 }
  0x14   : > { %s205_s10 = sadd.s32 (%p46_p3), %s1274_s22, %s1079_s8  ;;  %s1676_s0 = sld [smem:[#allocation4_spill]] (%p46_p3) }
  0x15   : > { %s1039_s11 = sshll.u32 (%p46_p3), %s205_s10, 2  ;;  %s202_s15 = scalar_lea.vmem (%p46_p3), [#allocation3], %s1036_s9 }
  0x1a   : > { %s207_s14 = scalar_lea.vmem %s1676_s0, %s1039_s11 }
  0x1b   : > { %v224_v0 = vld [vmem:[%s207_s14] sm:$0xf]  ;;  %v226_v1 = vld [vmem:[%s207_s14 + $0x8] sm:$0xf]  ;;  %v228_v2 = vld [vmem:[%s207_s14 + $0x10] sm:$0xf] }
  0x1c   : > { %225 = vst [vmem:[%s202_s15] sm:$0xf] %v224_v0  ;;  %227 = vst [vmem:[%s202_s15 + $0x4] sm:$0xf] %v226_v1  ;;  %v230_v3 = vld [vmem:[%s207_s14 + $0x18] sm:$0xf] }
  0x1d   : > { %229 = vst [vmem:[%s202_s15 + $0x8] sm:$0xf] %v228_v2  ;;  %v232_v4 = vld [vmem:[%s207_s14 + $0x20] sm:$0xf]  ;;  %v234_v5 = vld [vmem:[%s207_s14 + $0x28] sm:$0xf] }
  0x1e   : > { %231 = vst [vmem:[%s202_s15 + $0xc] sm:$0xf] %v230_v3  ;;  %233 = vst [vmem:[%s202_s15 + $0x10] sm:$0xf] %v232_v4  ;;  %v236_v6 = vld [vmem:[%s207_s14 + $0x30] sm:$0xf] }
  0x1f   : > { %235 = vst [vmem:[%s202_s15 + $0x14] sm:$0xf] %v234_v5  ;;  %v238_v7 = vld [vmem:[%s207_s14 + $0x38] sm:$0xf]  ;;  %237 = vst [vmem:[%s202_s15 + $0x18] sm:$0xf] %v236_v6 }
  0x20   : > { %239 = vst [vmem:[%s202_s15 + $0x1c] sm:$0xf] %v238_v7 }
  0x21 PF: > { %p1040_p7 = scmp.ge.s32.totalorder %s1282_s24, 1  ;;  %p305_p8 = scmp.lt.s32.totalorder %s1282_s24, 5 }
  0x23   : > { %p306_p9 = pnand %p1040_p7, %p305_p8 }
  0x24   : > { %s312_s16 = sand.u32 (!%p306_p9), 1, %s1258_s18   ;;  %s1042_s17 = sshll.u32 (!%p306_p9), %s1270_s21, 3 }
  0x25   : > { %309 = sbr.rel (%p306_p9) target bundleno = 545 (0x221), region = 73  ;;  %s1041_s27 = sshll.u32 (!%p306_p9), %s312_s16, 5 }
  0x26   : > { %p356_p10 = scmp.lt.s32.totalorder (!%p306_p9), %s1042_s17, 15  ;;  %s1044_s28 = sshll.u32 (!%p306_p9), %s1266_s20, 4 }
  0x27   : > { %p362_p11 = scmp.lt.s32.totalorder (!%p306_p9), %s1044_s28, 31  ;;  %p380_p12 = scmp.eq.s32.totalorder (!%p306_p9), %s1266_s20, 0 }
  0x28   : > { %s1403_s7 = scalar_lea.vmem (!%p306_p9), [#allocation3], %s1041_s27  ;;  %p1050_p13 = scmp.ne.s32.totalorder (!%p306_p9), %s1266_s20, 0 }
  0x2a   : > { %s1690_s17 = smov (!%p356_p10, %s1042_s17), 15  ;;  %s1692_s28 = smov (!%p362_p11, %s1044_s28), 31 }
  0x2b   : > { %s1043_s29 = sshll.u32 %s1690_s17, 2  ;;  %s1047_s30 = sshll.u32 %s1690_s17, 3 }
  0x2c   : > { %s1386_s9 = scalar_lea.vmem %s1670_s1, %s1043_s29  ;;  %s1391_s12 = scalar_lea.vmem %s1672_s3, %s1047_s30 }
  0x2d   : > { %s1396_s14 = scalar_lea.vmem %s1673_s4, %s1047_s30  ;;  %s1045_s15 = sshll.u32 %s1692_s28, 2 }
  0x2e   : > { %s1401_s17 = scalar_lea.vmem %s1671_s2, %s1045_s15  ;;  %383 = sbr.rel (%p1050_p13) target bundleno = 56 (0x38), region = 81 }
  0x33   : > { %vm384_vm0 = vcmask 523264   ;;  %v1284_v8 = vmov 0.0  }
  0x34   : > { %385 = vst.msk [vmem:[#allocation2] sm:$0xff] %vm384_vm0, %v1284_v8  ;;  %386 = vst.msk [vmem:[#allocation2 + $0x8] sm:$0xff] %vm384_vm0, %v1284_v8 }
  0x35   : > { %387 = vst.msk [vmem:[#allocation2 + $0x10] sm:$0xff] %vm384_vm0, %v1284_v8  ;;  %388 = vst.msk [vmem:[#allocation2 + $0x18] sm:$0xff] %vm384_vm0, %v1284_v8 }
  0x36   : > { %389 = vst.msk [vmem:[#allocation2 + $0x20] sm:$0xff] %vm384_vm0, %v1284_v8  ;;  %390 = vst.msk [vmem:[#allocation2 + $0x28] sm:$0xff] %vm384_vm0, %v1284_v8 }
  0x37   : > { %391 = vst.msk [vmem:[#allocation2 + $0x30] sm:$0xff] %vm384_vm0, %v1284_v8  ;;  %392 = vst.msk [vmem:[#allocation2 + $0x38] sm:$0xff] %vm384_vm0, %v1284_v8 }
  0x38 PF: > { %p393_p0 = scmp.eq.s32.totalorder %s1270_s21, 0 }
  0x3a   : > { %p394_p1 = pnand %p393_p0, %p380_p12 }
  0x3c   : > { %397 = sbr.rel (%p394_p1) target bundleno = 82 (0x52), region = 85 }
  0x41   : > { %vm398_vm1 = vcmask 523264   ;;  %v1285_v9 = vmov 0.0  }
  0x42   : > { %399 = vst.msk [vmem:[%s1674_s5] sm:$0xff] %vm398_vm1, %v1285_v9  ;;  %400 = vst.msk [vmem:[%s1674_s5 + $0x8] sm:$0xff] %vm398_vm1, %v1285_v9 }
  0x43   : > { %401 = vst.msk [vmem:[%s1674_s5 + $0x10] sm:$0xff] %vm398_vm1, %v1285_v9  ;;  %402 = vst.msk [vmem:[%s1674_s5 + $0x18] sm:$0xff] %vm398_vm1, %v1285_v9 }
  0x44   : > { %403 = vst.msk [vmem:[%s1674_s5 + $0x20] sm:$0xff] %vm398_vm1, %v1285_v9  ;;  %404 = vst.msk [vmem:[%s1674_s5 + $0x28] sm:$0xff] %vm398_vm1, %v1285_v9 }
  0x45   : > { %405 = vst.msk [vmem:[%s1674_s5 + $0x30] sm:$0xff] %vm398_vm1, %v1285_v9  ;;  %406 = vst.msk [vmem:[%s1674_s5 + $0x38] sm:$0xff] %vm398_vm1, %v1285_v9 }
  0x46   : > { %407 = vst.msk [vmem:[%s1674_s5 + $0x40] sm:$0xff] %vm398_vm1, %v1285_v9  ;;  %408 = vst.msk [vmem:[%s1674_s5 + $0x48] sm:$0xff] %vm398_vm1, %v1285_v9 }
  0x47   : > { %409 = vst.msk [vmem:[%s1674_s5 + $0x50] sm:$0xff] %vm398_vm1, %v1285_v9  ;;  %410 = vst.msk [vmem:[%s1674_s5 + $0x58] sm:$0xff] %vm398_vm1, %v1285_v9 }
  0x48   : > { %411 = vst.msk [vmem:[%s1674_s5 + $0x60] sm:$0xff] %vm398_vm1, %v1285_v9  ;;  %412 = vst.msk [vmem:[%s1674_s5 + $0x68] sm:$0xff] %vm398_vm1, %v1285_v9 }
  0x49   : > { %413 = vst.msk [vmem:[%s1674_s5 + $0x70] sm:$0xff] %vm398_vm1, %v1285_v9  ;;  %414 = vst.msk [vmem:[%s1674_s5 + $0x78] sm:$0xff] %vm398_vm1, %v1285_v9 }
  0x4a   : > { %415 = vst.msk [vmem:[%s1674_s5 + $0x80] sm:$0xff] %vm398_vm1, %v1285_v9  ;;  %416 = vst.msk [vmem:[%s1674_s5 + $0x88] sm:$0xff] %vm398_vm1, %v1285_v9 }
  0x4b   : > { %417 = vst.msk [vmem:[%s1674_s5 + $0x90] sm:$0xff] %vm398_vm1, %v1285_v9  ;;  %418 = vst.msk [vmem:[%s1674_s5 + $0x98] sm:$0xff] %vm398_vm1, %v1285_v9 }
  0x4c   : > { %419 = vst.msk [vmem:[%s1674_s5 + $0xa0] sm:$0xff] %vm398_vm1, %v1285_v9  ;;  %420 = vst.msk [vmem:[%s1674_s5 + $0xa8] sm:$0xff] %vm398_vm1, %v1285_v9 }
  0x4d   : > { %421 = vst.msk [vmem:[%s1674_s5 + $0xb0] sm:$0xff] %vm398_vm1, %v1285_v9  ;;  %422 = vst.msk [vmem:[%s1674_s5 + $0xb8] sm:$0xff] %vm398_vm1, %v1285_v9 }
  0x4e   : > { %423 = vst.msk [vmem:[%s1674_s5 + $0xc0] sm:$0xff] %vm398_vm1, %v1285_v9  ;;  %424 = vst.msk [vmem:[%s1674_s5 + $0xc8] sm:$0xff] %vm398_vm1, %v1285_v9 }
  0x4f   : > { %425 = vst.msk [vmem:[%s1674_s5 + $0xd0] sm:$0xff] %vm398_vm1, %v1285_v9  ;;  %426 = vst.msk [vmem:[%s1674_s5 + $0xd8] sm:$0xff] %vm398_vm1, %v1285_v9 }
  0x50   : > { %427 = vst.msk [vmem:[%s1674_s5 + $0xe0] sm:$0xff] %vm398_vm1, %v1285_v9  ;;  %428 = vst.msk [vmem:[%s1674_s5 + $0xe8] sm:$0xff] %vm398_vm1, %v1285_v9 }
  0x51   : > { %429 = vst.msk [vmem:[%s1674_s5 + $0xf0] sm:$0xff] %vm398_vm1, %v1285_v9  ;;  %430 = vst.msk [vmem:[%s1674_s5 + $0xf8] sm:$0xff] %vm398_vm1, %v1285_v9 }
  0x52 PF: > { %v1212_v10 = vld [vmem:[%s1403_s7] sm:$0xff]   ;;  %v1213_v11 = vld [vmem:[%s1403_s7 + $0x8] sm:$0xff]   ;;  %v1214_v12 = vld [vmem:[%s1403_s7 + $0x10] sm:$0xff]   ;;  %vm616_vm2 = vcmask 523264   ;;  %p1076_p2 = scmp.ne.s32.totalorder %s1266_s20, 1 }
  0x53   : > { %625 = vxpose.xlu0.c.b16.start [1/4] (short) %v1212_v10, 128  ;;  %1120 = vmatprep.mubr.bf16.mxu0 %v1212_v10  ;;  %v1216_v13 = vld [vmem:[%s1401_s17 + $0x38] sm:$0xff]   ;;  %v1217_v14 = vld [vmem:[%s1401_s17 + $0x30] sm:$0xff]   ;;  %v1219_v16 = vld [vmem:[%s1401_s17 + $0x28] sm:$0xff]   ;;  %s1286_s0 = smov (!%p1076_p2), 64  }
  0x54   : > { %1104 = vmatprep.subr.bf16.mxu0 %v1216_v13  ;;  %v1218_v15 = vld [vmem:[%s1386_s9 + $0x18] sm:$0xff]   ;;  %v1220_v17 = vld [vmem:[%s1386_s9 + $0x10] sm:$0xff]   ;;  %v1222_v19 = vld [vmem:[%s1386_s9 + $0x8] sm:$0xff]  }
  0x55   : > { %1105 = vmatpush3.bf16.msra.mxu0 %v1216_v13  ;;  %1128 = vmatprep.subr.bf16.mxu1 %v1218_v15  ;;  %v1215_v18 = vld [vmem:[%s1403_s7 + $0x18] sm:$0xff]   ;;  %v1221_v20 = vld [vmem:[%s1401_s17 + $0x20] sm:$0xff]   ;;  %v1225_v23 = vld [vmem:[%s1401_s17 + $0x10] sm:$0xff]  }
  0x56   : > { %1106 = vmatprep.subr.bf16.mxu0 %v1217_v14  ;;  %1129 = vmatpush3.bf16.msra.mxu1 %v1218_v15  ;;  %v1224_v21 = vld [vmem:[%s1386_s9] sm:$0xff]   ;;  %v1223_v22 = vld [vmem:[%s1401_s17 + $0x18] sm:$0xff]   ;;  %v1226_v24 = vld [vmem:[%s1401_s17 + $0x8] sm:$0xff]   ;;  %s1075_s9 = sshll.u32 %s1266_s20, 7 }
  0x57   : > { %626 = vxpose.xlu0.c.b16.cont [2/4] (short) %v1213_v11, 128  ;;  %1130 = vmatprep.subr.bf16.mxu1 %v1220_v17  ;;  %v1227_v25 = vld [vmem:[%s1401_s17] sm:$0xff]   ;;  %v465_v34 = vld [vmem:[#allocation2 + $0x10] sm:$0xff]  ;;  %v466_v39 = vld [vmem:[#allocation2 + $0x18] sm:$0xff]  ;;  %s1573_s16 = scalar_lea.vmem %s1674_s5, %s1075_s9 }
  0x58   : > { %v463_v36 = vld [vmem:[#allocation2] sm:$0xff]  ;;  %v464_v42 = vld [vmem:[#allocation2 + $0x8] sm:$0xff]  ;;  %v469_v45 = vld [vmem:[#allocation2 + $0x30] sm:$0xff] }
  0x59   : > { %1107 = vmatpush3.bf16.msra.mxu0 %v1217_v14  ;;  %v467_v48 = vld [vmem:[#allocation2 + $0x20] sm:$0xff]  ;;  %v470_v51 = vld [vmem:[#allocation2 + $0x38] sm:$0xff]  ;;  %v468_v54 = vld [vmem:[#allocation2 + $0x28] sm:$0xff] }
  0x5a   : > { %1108 = vmatprep.subr.bf16.mxu0 %v1219_v16  ;;  %1131 = vmatpush3.bf16.msra.mxu1 %v1220_v17  ;;  %v790_v58 = vld [vmem:[%s1573_s16 + $0x10] sm:$0xff]  ;;  %v788_v60 = vld [vmem:[%s1573_s16] sm:$0xff]  ;;  %v791_v63 = vld [vmem:[%s1573_s16 + $0x18] sm:$0xff] }
  0x5b   : > { %627 = vxpose.xlu0.c.b16.cont [3/4] (short) %v1214_v12, 128  ;;  %1132 = vmatprep.subr.bf16.mxu1 %v1222_v19  ;;  %v789_v2 = vld [vmem:[%s1573_s16 + $0x8] sm:$0xff]  ;;  %v794_v5 = vld [vmem:[%s1573_s16 + $0x30] sm:$0xff]  ;;  %v792_v8 = vld [vmem:[%s1573_s16 + $0x20] sm:$0xff] }
  0x5c   : > { %v793_v14 = vld [vmem:[%s1573_s16 + $0x28] sm:$0xff]  ;;  %v798_v17 = vld [vmem:[%s1573_s16 + $0x50] sm:$0xff] }
  0x5d   : > { %1109 = vmatpush3.bf16.msra.mxu0 %v1219_v16 }
  0x5e   : > { %1110 = vmatprep.subr.bf16.mxu0 %v1221_v20  ;;  %1133 = vmatpush3.bf16.msra.mxu1 %v1222_v19 }
  0x5f   : > { %628 = vxpose.xlu0.c.b16.end [4/4] (short) %v1215_v18, 128  ;;  %1134 = vmatprep.subr.bf16.mxu1 %v1224_v21 }
  0x61   : > { %1111 = vmatpush3.bf16.msra.mxu0 %v1221_v20  ;;  %v796_v20 = vld [vmem:[%s1573_s16 + $0x40] sm:$0xff] }
  0x62   : > { %1112 = vmatprep.subr.bf16.mxu0 %v1223_v22  ;;  %1135 = vmatpush3.bf16.msra.mxu1 %v1224_v21 }
  0x65   : > { %1113 = vmatpush3.bf16.msra.mxu0 %v1223_v22 }
  0x66   : > { %1114 = vmatprep.subr.bf16.mxu0 %v1225_v23 }
  0x69   : > { %1115 = vmatpush3.bf16.msra.mxu0 %v1225_v23  ;;  %v799_v23 = vld [vmem:[%s1573_s16 + $0x58] sm:$0xff] }
  0x6a   : > { %1116 = vmatprep.subr.bf16.mxu0 %v1226_v24 }
  0x6d   : > { %1117 = vmatpush3.bf16.msra.mxu0 %v1226_v24 }
  0x6e   : > { %1118 = vmatprep.subr.bf16.mxu0 %v1227_v25 }
  0x71   : > { %1119 = vmatpush3.bf16.msra.mxu0 %v1227_v25 }
  0x74   : > { %1121 = vmatmul.mubr.bf16.vlgmr.msra.gmra.mxu0 %v1213_v11  ;;  %v795_v11 = vld [vmem:[%s1573_s16 + $0x38] sm:$0xff] }
  0x75   : > { %1124 = vmatprep.mubr.bf16.mxu0 %v1214_v12 }
  0x7c   : > { %1125 = vmatmul.mubr.bf16.gmra.mxu0 %v1215_v18 }
  0xb5   : > { %v633_v26 = vpop.trf.xlu0 }
  0xb6   : > { %1136 = vmatprep.mubr.msk.bf16.mxu1 %vm616_vm2, %v633_v26  ;;  %v797_v26 = vld [vmem:[%s1573_s16 + $0x48] sm:$0xff] }
  0xb9   : > { %v634_v27 = vpop.trf.xlu0 }
  0xba   : > { %1137 = vmatmul.mubr.msk.bf16.vlgmr.msra.gmra.mxu1 %vm616_vm2, %v634_v27 }
  0xbd   : > { %v635_v28 = vpop.trf.xlu0 }
  0xbe   : > { %1140 = vmatprep.mubr.msk.bf16.mxu1 %vm616_vm2, %v635_v28 }
  0xc1   : > { %v636_v29 = vpop.trf.xlu0 }
  0xc2   : > { %1141 = vmatmul.mubr.msk.bf16.gmra.mxu1 %vm616_vm2, %v636_v29  ;;  %v802_v29 = vld [vmem:[%s1573_s16 + $0x70] sm:$0xff] }
  0xc5   : > { %v637_v30 = vpop.trf.xlu0 }
  0xc6   : > { %1144 = vmatprep.mubr.msk.bf16.mxu1 %vm616_vm2, %v637_v30 }
  0xc9   : > { %v638_v31 = vpop.trf.xlu0 }
  0xca   : > { %1145 = vmatmul.mubr.msk.bf16.gmra.mxu1 %vm616_vm2, %v638_v31 }
  0xcd   : > { %v639_v32 = vpop.trf.xlu0 }
  0xce   : > { %1148 = vmatprep.mubr.msk.bf16.mxu1 %vm616_vm2, %v639_v32  ;;  %v800_v32 = vld [vmem:[%s1573_s16 + $0x60] sm:$0xff] }
  0xd1   : > { %v640_v33 = vpop.trf.xlu0 }
  0xd2   : > { %1149 = vmatmul.mubr.msk.bf16.gmra.mxu1 %vm616_vm2, %v640_v33 }
 0x134   : > { %v1122_v35 = vpop.f32.mrf.mxu0 }
 0x135   : > { %v610_v37 = vadd.f32 %v1122_v35, %v465_v34  ;;  %v803_v35 = vld [vmem:[%s1573_s16 + $0x78] sm:$0xff] }
 0x136   : > { %v577_v38 = vpop.f32.mrf.mxu0 }
 0x137   : > { %619 = vst.msk [vmem:[#allocation2 + $0x10] sm:$0xff] %vm616_vm2, %v610_v37  ;;  %v608_v40 = vadd.f32 %v577_v38, %v463_v36  ;;  %v801_v38 = vld [vmem:[%s1573_s16 + $0x68] sm:$0xff] }
 0x138   : > { %v1123_v41 = vpop.f32.mrf.mxu0 }
 0x139   : > { %617 = vst.msk [vmem:[#allocation2] sm:$0xff] %vm616_vm2, %v608_v40  ;;  %v611_v43 = vadd.f32 %v1123_v41, %v466_v39 }
 0x13a   : > { %v580_v44 = vpop.f32.mrf.mxu0 }
 0x13b   : > { %620 = vst.msk [vmem:[#allocation2 + $0x18] sm:$0xff] %vm616_vm2, %v611_v43  ;;  %v609_v46 = vadd.f32 %v580_v44, %v464_v42 }
 0x13c   : > { %v1126_v47 = vpop.f32.mrf.mxu0 }
 0x13d   : > { %618 = vst.msk [vmem:[#allocation2 + $0x8] sm:$0xff] %vm616_vm2, %v609_v46  ;;  %v614_v49 = vadd.f32 %v1126_v47, %v469_v45 }
 0x13e   : > { %v593_v50 = vpop.f32.mrf.mxu0 }
 0x13f   : > { %623 = vst.msk [vmem:[#allocation2 + $0x30] sm:$0xff] %vm616_vm2, %v614_v49  ;;  %v612_v52 = vadd.f32 %v593_v50, %v467_v48 }
 0x140   : > { %v1127_v53 = vpop.f32.mrf.mxu0 }
 0x141   : > { %621 = vst.msk [vmem:[#allocation2 + $0x20] sm:$0xff] %vm616_vm2, %v612_v52  ;;  %v615_v55 = vadd.f32 %v1127_v53, %v470_v51 }
 0x142   : > { %v596_v56 = vpop.f32.mrf.mxu0 }
 0x143   : > { %624 = vst.msk [vmem:[#allocation2 + $0x38] sm:$0xff] %vm616_vm2, %v615_v55  ;;  %v613_v57 = vadd.f32 %v596_v56, %v468_v54 }
 0x145   : > { %622 = vst.msk [vmem:[#allocation2 + $0x28] sm:$0xff] %vm616_vm2, %v613_v57 }
 0x17a   : > { %v1138_v59 = vpop.f32.mrf.mxu1 }
 0x17b   : > { %v806_v61 = vadd.f32 %v1138_v59, %v790_v58 }
 0x17c   : > { %v723_v62 = vpop.f32.mrf.mxu1 }
 0x17d   : > { %822 = vst.msk [vmem:[%s1573_s16 + $0x10] sm:$0xff] %vm616_vm2, %v806_v61  ;;  %v804_v0 = vadd.f32 %v788_v60, %v723_v62 }
 0x17e   : > { %v1139_v1 = vpop.f32.mrf.mxu1 }
 0x17f   : > { %820 = vst.msk [vmem:[%s1573_s16] sm:$0xff] %vm616_vm2, %v804_v0  ;;  %v807_v3 = vadd.f32 %v1139_v1, %v791_v63 }
 0x180   : > { %v726_v4 = vpop.f32.mrf.mxu1 }
 0x181   : > { %823 = vst.msk [vmem:[%s1573_s16 + $0x18] sm:$0xff] %vm616_vm2, %v807_v3  ;;  %v805_v6 = vadd.f32 %v789_v2, %v726_v4 }
 0x182   : > { %v1142_v7 = vpop.f32.mrf.mxu1 }
 0x183   : > { %821 = vst.msk [vmem:[%s1573_s16 + $0x8] sm:$0xff] %vm616_vm2, %v805_v6  ;;  %v810_v9 = vadd.f32 %v1142_v7, %v794_v5 }
 0x184   : > { %v739_v10 = vpop.f32.mrf.mxu1 }
 0x185   : > { %826 = vst.msk [vmem:[%s1573_s16 + $0x30] sm:$0xff] %vm616_vm2, %v810_v9  ;;  %v808_v12 = vadd.f32 %v792_v8, %v739_v10 }
 0x186   : > { %v1143_v13 = vpop.f32.mrf.mxu1 }
 0x187   : > { %824 = vst.msk [vmem:[%s1573_s16 + $0x20] sm:$0xff] %vm616_vm2, %v808_v12  ;;  %v811_v15 = vadd.f32 %v1143_v13, %v795_v11 }
 0x188   : > { %v742_v16 = vpop.f32.mrf.mxu1 }
 0x189   : > { %827 = vst.msk [vmem:[%s1573_s16 + $0x38] sm:$0xff] %vm616_vm2, %v811_v15  ;;  %v809_v18 = vadd.f32 %v793_v14, %v742_v16 }
 0x18a   : > { %v1146_v19 = vpop.f32.mrf.mxu1 }
 0x18b   : > { %825 = vst.msk [vmem:[%s1573_s16 + $0x28] sm:$0xff] %vm616_vm2, %v809_v18  ;;  %v814_v21 = vadd.f32 %v1146_v19, %v798_v17 }
 0x18c   : > { %v755_v22 = vpop.f32.mrf.mxu1 }
 0x18d   : > { %830 = vst.msk [vmem:[%s1573_s16 + $0x50] sm:$0xff] %vm616_vm2, %v814_v21  ;;  %v812_v24 = vadd.f32 %v796_v20, %v755_v22 }
 0x18e   : > { %v1147_v25 = vpop.f32.mrf.mxu1 }
 0x18f   : > { %828 = vst.msk [vmem:[%s1573_s16 + $0x40] sm:$0xff] %vm616_vm2, %v812_v24  ;;  %v815_v27 = vadd.f32 %v1147_v25, %v799_v23 }
 0x190   : > { %v758_v28 = vpop.f32.mrf.mxu1 }
 0x191   : > { %831 = vst.msk [vmem:[%s1573_s16 + $0x58] sm:$0xff] %vm616_vm2, %v815_v27  ;;  %v813_v30 = vadd.f32 %v797_v26, %v758_v28 }
 0x192   : > { %v1150_v31 = vpop.f32.mrf.mxu1 }
 0x193   : > { %829 = vst.msk [vmem:[%s1573_s16 + $0x48] sm:$0xff] %vm616_vm2, %v813_v30  ;;  %v818_v33 = vadd.f32 %v1150_v31, %v802_v29 }
 0x194   : > { %v771_v34 = vpop.f32.mrf.mxu1 }
 0x195   : > { %834 = vst.msk [vmem:[%s1573_s16 + $0x70] sm:$0xff] %vm616_vm2, %v818_v33  ;;  %v816_v36 = vadd.f32 %v800_v32, %v771_v34 }
 0x196   : > { %v1151_v37 = vpop.f32.mrf.mxu1 }
 0x197   : > { %832 = vst.msk [vmem:[%s1573_s16 + $0x60] sm:$0xff] %vm616_vm2, %v816_v36  ;;  %v819_v39 = vadd.f32 %v1151_v37, %v803_v35  ;;  %839 = sbr.rel (%p1076_p2) target bundleno = 545 (0x221), region = 89 }
 0x198   : > { %v774_v40 = vpop.f32.mrf.mxu1 }
 0x199   : > { %835 = vst.msk [vmem:[%s1573_s16 + $0x78] sm:$0xff] %vm616_vm2, %v819_v39  ;;  %v817_v41 = vadd.f32 %v801_v38, %v774_v40 }
 0x19b   : > { %833 = vst.msk [vmem:[%s1573_s16 + $0x68] sm:$0xff] %vm616_vm2, %v817_v41 }
 0x19c   : > { %v842_v42 = vld [vmem:[#allocation2 + $0x10] sm:$0xff]  ;;  %v840_v44 = vld [vmem:[#allocation2] sm:$0xff]  ;;  %v843_v47 = vld [vmem:[#allocation2 + $0x18] sm:$0xff] }
 0x19d   : > { %v850_v43 = vld [vmem:[%s1391_s12 + $0x10] sm:$0xff]  ;;  %v848_v46 = vld [vmem:[%s1391_s12] sm:$0xff]  ;;  %v851_v48 = vld [vmem:[%s1391_s12 + $0x18] sm:$0xff] }
 0x19e   : > { %v858_v45 = vadd.f32 %v850_v43, %v842_v42  ;;  %v856_v49 = vadd.f32 %v848_v46, %v840_v44  ;;  %v841_v50 = vld [vmem:[#allocation2 + $0x8] sm:$0xff]  ;;  %v859_v52 = vadd.f32 %v851_v48, %v843_v47  ;;  %v844_v56 = vld [vmem:[#allocation2 + $0x20] sm:$0xff]  ;;  %v847_v60 = vld [vmem:[#allocation2 + $0x38] sm:$0xff] }
 0x19f   : > { %v849_v51 = vld [vmem:[%s1391_s12 + $0x8] sm:$0xff]  ;;  %v852_v57 = vld [vmem:[%s1391_s12 + $0x20] sm:$0xff]  ;;  %v855_v61 = vld [vmem:[%s1391_s12 + $0x38] sm:$0xff] }
 0x1a0   : > { %876 = vrot.lane.b32.xlu1 %v858_v45, %s1286_s0  ;;  %872 = vrot.lane.b32.xlu0 %v856_v49, %s1286_s0  ;;  %v857_v53 = vadd.f32 %v849_v51, %v841_v50  ;;  %v845_v54 = vld [vmem:[#allocation2 + $0x28] sm:$0xff]  ;;  %v860_v59 = vadd.f32 %v852_v57, %v844_v56  ;;  %v846_v62 = vld [vmem:[#allocation2 + $0x30] sm:$0xff]  ;;  %v863_v0 = vadd.f32 %v855_v61, %v847_v60 }
 0x1a1   : > { %v853_v55 = vld [vmem:[%s1391_s12 + $0x28] sm:$0xff]  ;;  %v854_v63 = vld [vmem:[%s1391_s12 + $0x30] sm:$0xff] }
 0x1a2   : > { %v861_v58 = vadd.f32 %v853_v55, %v845_v54  ;;  %v862_v1 = vadd.f32 %v854_v63, %v846_v62 }
 0x1a4   : > { %878 = vrot.lane.b32.xlu1 %v859_v52, %s1286_s0  ;;  %874 = vrot.lane.b32.xlu0 %v857_v53, %s1286_s0 }
 0x1a8   : > { %882 = vrot.lane.b32.xlu1 %v861_v58, %s1286_s0  ;;  %880 = vrot.lane.b32.xlu0 %v860_v59, %s1286_s0 }
 0x1ac   : > { %886 = vrot.lane.b32.xlu1 %v863_v0, %s1286_s0  ;;  %884 = vrot.lane.b32.xlu0 %v862_v1, %s1286_s0 }
 0x212   : > { %v877_v2 = vpop.permute.xlu1 %876  ;;  %v873_v4 = vpop.permute.xlu0 %872 }
 0x213   : > { %v898_v3 = vsel %vm616_vm2, %v842_v42, %v877_v2  ;;  %v896_v5 = vsel %vm616_vm2, %v840_v44, %v873_v4 }
 0x214   : > { %906 = vst [vmem:[%s1396_s14 + $0x10] sm:$0xff] %v898_v3  ;;  %904 = vst [vmem:[%s1396_s14] sm:$0xff] %v896_v5 }
 0x216   : > { %v879_v6 = vpop.permute.xlu1 %878  ;;  %v875_v8 = vpop.permute.xlu0 %874 }
 0x217   : > { %v899_v7 = vsel %vm616_vm2, %v843_v47, %v879_v6  ;;  %v897_v9 = vsel %vm616_vm2, %v841_v50, %v875_v8 }
 0x218   : > { %907 = vst [vmem:[%s1396_s14 + $0x18] sm:$0xff] %v899_v7  ;;  %905 = vst [vmem:[%s1396_s14 + $0x8] sm:$0xff] %v897_v9 }
 0x21a   : > { %v883_v10 = vpop.permute.xlu1 %882  ;;  %v881_v12 = vpop.permute.xlu0 %880 }
 0x21b   : > { %v901_v11 = vsel %vm616_vm2, %v845_v54, %v883_v10  ;;  %v900_v13 = vsel %vm616_vm2, %v844_v56, %v881_v12 }
 0x21c   : > { %909 = vst [vmem:[%s1396_s14 + $0x28] sm:$0xff] %v901_v11  ;;  %908 = vst [vmem:[%s1396_s14 + $0x20] sm:$0xff] %v900_v13 }
 0x21e   : > { %v887_v14 = vpop.permute.xlu1 %886  ;;  %v885_v16 = vpop.permute.xlu0 %884 }
 0x21f   : > { %v903_v15 = vsel %vm616_vm2, %v847_v60, %v887_v14  ;;  %v902_v17 = vsel %vm616_vm2, %v846_v62, %v885_v16 }
 0x220   : > { %911 = vst [vmem:[%s1396_s14 + $0x38] sm:$0xff] %v903_v15  ;;  %910 = vst [vmem:[%s1396_s14 + $0x30] sm:$0xff] %v902_v17 }
 0x221 PF: > { %s16_s24 = sadd.s32 1, %s1282_s24   ;;  %s1677_s18 = smov %s1262_s19 }
 0x222   : > { %p13_p3 = scmp.ge.s32.totalorder %s16_s24, 6   ;;  %s1678_s19 = smov %s1368_s6 }
 0x223   : > { %s1679_s20 = smov %s1274_s22  ;;  %s1680_s21 = smov %s1278_s23 }
 0x224   : > { %s1681_s22 = smov %s1684_s25  ;;  %s1682_s23 = smov %s1688_s26 }
 0x225   :  { %15 = sbr.rel (!%p13_p3) target bundleno = 6 (0x6), region = 142 }

// kernel: paac_forward.5
= control target key start
LH: loop header
LB: loop body
LE: loop exit
PB: predicated region body
PF: predicated region fallthrough
CT: control target
= control target key end

     0   :  { %s1677_s0 = inlined_call_operand.vmem [shape: bf16[128,256], index: 0, kind: input, shape index: {}]   ;;  %s1678_s1 = inlined_call_operand.vmem [shape: bf16[128,64], index: 1, kind: input, shape index: {}]   ;;  %s1679_s2 = inlined_call_operand.vmem [shape: bf16[256,64], index: 2, kind: input, shape index: {}]   ;;  %s1680_s3 = inlined_call_operand.vmem [shape: f32[128,64], index: 3, kind: input, shape index: {}]   ;;  %s1681_s4 = inlined_call_operand.vmem [shape: f32[128,128], index: 4, kind: output, shape index: {0}]   ;;  %s1682_s5 = inlined_call_operand.vmem [shape: f32[256,64], index: 5, kind: output, shape index: {1}]  }
   0x1   :  { %1683 = sst [smem:[#allocation4_spill]] %s1677_s0 }
   0x2   :  { %s1325_s18 = smov 0   ;;  %s1327_s19 = smov 0  }
   0x3   :  { %s1329_s20 = smov 0   ;;  %s1331_s21 = smov 0  }
   0x4   :  { %s1333_s22 = smov 0   ;;  %s1335_s23 = smov 0  }
   0x5   :  { %s1337_s24 = smov 0  }
   0x6 LB: > { %s25_s25 = sadd.s32 1, %s1282_s22  ;;  %s28_s26 = sadd.s32 1, %s1286_s23  ;;  %s1290_s24 = sphi %s1337_s24, %s16_s24   ;;  %s1286_s23 = sphi %s1335_s23, %s1690_s23   ;;  %s1282_s22 = sphi %s1333_s22, %s1689_s22   ;;  %s1278_s21 = sphi %s1331_s21, %s1688_s21   ;;  %s1274_s20 = sphi %s1329_s20, %s1687_s20   ;;  %s1270_s19 = sphi %s1327_s19, %s1686_s19   ;;  %s1266_s18 = sphi %s1325_s18, %s1685_s18  }
   0x7   : > { %p26_p0 = scmp.ge.s32.totalorder %s25_s25, 2  ;;  %p44_p1 = scmp.ne.s32.totalorder %s1270_s19, %s1266_s18 }
   0x8   : > { %p45_p2 = scmp.eq.s32.totalorder %s1290_s24, 0  ;;  %s37_s30 = sadd.s32 1, %s1270_s19 }
   0x9   : > { %s1692_s25 = smov (%p26_p0, %s25_s25), 0  ;;  %s1694_s26 = smov (!%p26_p0, %s28_s26), %s1286_s23 }
   0xa   : > { %p46_p3 = por %p45_p2, %p44_p1  ;;  %p30_p4 = scmp.ge.s32.totalorder %s1694_s26, 2 }
   0xb   : > { %s33_s27 = ssub.s32 %s1282_s22, %s1692_s25  ;;  %p1043_p6 = scmp.ge.s32.totalorder %s1290_s24, 4 }
   0xc   : > { %s1696_s26 = smov (%p30_p4, %s1694_s26), 0 }
   0xd   : > { %s32_s28 = ssub.s32 %s1286_s23, %s1696_s26  ;;  %195 = sbr.rel (%p1043_p6) target bundleno = 33 (0x21), region = 16 }
   0xe   : > { %s34_s29 = sor.u32 %s33_s27, %s32_s28 }
   0xf   : > { %p35_p5 = scmp.eq.s32.totalorder %s34_s29, 0 }
  0x11   : > { %s1376_s6 = scalar_select %p35_p5, %s1270_s19, %s37_s30  }
  0x12   : > { %198 = sbr.rel (!%p46_p3) target bundleno = 33 (0x21), region = 20  ;;  %s200_s7 = sand.u32 (%p46_p3), 1, %s1270_s19  }
  0x13   : > { %s1087_s8 = sshll.u32 (%p46_p3), %s1286_s23, 4  ;;  %s1044_s9 = sshll.u32 (%p46_p3), %s200_s7, 5 }
  0x14   : > { %s205_s10 = sadd.s32 (%p46_p3), %s1282_s22, %s1087_s8  ;;  %s1684_s0 = sld [smem:[#allocation4_spill]] (%p46_p3) }
  0x15   : > { %s1047_s11 = sshll.u32 (%p46_p3), %s205_s10, 2  ;;  %s202_s15 = scalar_lea.vmem (%p46_p3), [#allocation3], %s1044_s9 }
  0x1a   : > { %s207_s14 = scalar_lea.vmem %s1684_s0, %s1047_s11 }
  0x1b   : > { %v224_v0 = vld [vmem:[%s207_s14] sm:$0xf]  ;;  %v226_v1 = vld [vmem:[%s207_s14 + $0x8] sm:$0xf]  ;;  %v228_v2 = vld [vmem:[%s207_s14 + $0x10] sm:$0xf] }
  0x1c   : > { %225 = vst [vmem:[%s202_s15] sm:$0xf] %v224_v0  ;;  %227 = vst [vmem:[%s202_s15 + $0x4] sm:$0xf] %v226_v1  ;;  %v230_v3 = vld [vmem:[%s207_s14 + $0x18] sm:$0xf] }
  0x1d   : > { %229 = vst [vmem:[%s202_s15 + $0x8] sm:$0xf] %v228_v2  ;;  %v232_v4 = vld [vmem:[%s207_s14 + $0x20] sm:$0xf]  ;;  %v234_v5 = vld [vmem:[%s207_s14 + $0x28] sm:$0xf] }
  0x1e   : > { %231 = vst [vmem:[%s202_s15 + $0xc] sm:$0xf] %v230_v3  ;;  %233 = vst [vmem:[%s202_s15 + $0x10] sm:$0xf] %v232_v4  ;;  %v236_v6 = vld [vmem:[%s207_s14 + $0x30] sm:$0xf] }
  0x1f   : > { %235 = vst [vmem:[%s202_s15 + $0x14] sm:$0xf] %v234_v5  ;;  %v238_v7 = vld [vmem:[%s207_s14 + $0x38] sm:$0xf]  ;;  %237 = vst [vmem:[%s202_s15 + $0x18] sm:$0xf] %v236_v6 }
  0x20   : > { %239 = vst [vmem:[%s202_s15 + $0x1c] sm:$0xf] %v238_v7 }
  0x21 PF: > { %p1048_p7 = scmp.ge.s32.totalorder %s1290_s24, 1  ;;  %p305_p8 = scmp.lt.s32.totalorder %s1290_s24, 5 }
  0x23   : > { %p306_p9 = pnand %p1048_p7, %p305_p8 }
  0x24   : > { %s312_s16 = sand.u32 (!%p306_p9), 1, %s1266_s18   ;;  %s1050_s17 = sshll.u32 (!%p306_p9), %s1278_s21, 3 }
  0x25   : > { %309 = sbr.rel (%p306_p9) target bundleno = 547 (0x223), region = 73  ;;  %s1049_s27 = sshll.u32 (!%p306_p9), %s312_s16, 5 }
  0x26   : > { %p356_p10 = scmp.lt.s32.totalorder (!%p306_p9), %s1050_s17, 15  ;;  %s1052_s28 = sshll.u32 (!%p306_p9), %s1274_s20, 4 }
  0x27   : > { %p362_p11 = scmp.lt.s32.totalorder (!%p306_p9), %s1052_s28, 31  ;;  %p380_p12 = scmp.eq.s32.totalorder (!%p306_p9), %s1274_s20, 0 }
  0x28   : > { %s1411_s7 = scalar_lea.vmem (!%p306_p9), [#allocation3], %s1049_s27  ;;  %p1058_p13 = scmp.ne.s32.totalorder (!%p306_p9), %s1274_s20, 0 }
  0x2a   : > { %s1698_s17 = smov (!%p356_p10, %s1050_s17), 15  ;;  %s1700_s28 = smov (!%p362_p11, %s1052_s28), 31 }
  0x2b   : > { %s1051_s29 = sshll.u32 %s1698_s17, 2  ;;  %s1055_s30 = sshll.u32 %s1698_s17, 3 }
  0x2c   : > { %s1394_s9 = scalar_lea.vmem %s1678_s1, %s1051_s29  ;;  %s1399_s12 = scalar_lea.vmem %s1680_s3, %s1055_s30 }
  0x2d   : > { %s1404_s14 = scalar_lea.vmem %s1681_s4, %s1055_s30  ;;  %s1053_s15 = sshll.u32 %s1700_s28, 2 }
  0x2e   : > { %s1409_s17 = scalar_lea.vmem %s1679_s2, %s1053_s15  ;;  %383 = sbr.rel (%p1058_p13) target bundleno = 56 (0x38), region = 81 }
  0x33   : > { %vm384_vm0 = vcmask 523264   ;;  %v1292_v8 = vmov 0.0  }
  0x34   : > { %385 = vst.msk [vmem:[#allocation2] sm:$0xff] %vm384_vm0, %v1292_v8  ;;  %386 = vst.msk [vmem:[#allocation2 + $0x8] sm:$0xff] %vm384_vm0, %v1292_v8 }
  0x35   : > { %387 = vst.msk [vmem:[#allocation2 + $0x10] sm:$0xff] %vm384_vm0, %v1292_v8  ;;  %388 = vst.msk [vmem:[#allocation2 + $0x18] sm:$0xff] %vm384_vm0, %v1292_v8 }
  0x36   : > { %389 = vst.msk [vmem:[#allocation2 + $0x20] sm:$0xff] %vm384_vm0, %v1292_v8  ;;  %390 = vst.msk [vmem:[#allocation2 + $0x28] sm:$0xff] %vm384_vm0, %v1292_v8 }
  0x37   : > { %391 = vst.msk [vmem:[#allocation2 + $0x30] sm:$0xff] %vm384_vm0, %v1292_v8  ;;  %392 = vst.msk [vmem:[#allocation2 + $0x38] sm:$0xff] %vm384_vm0, %v1292_v8 }
  0x38 PF: > { %p393_p0 = scmp.eq.s32.totalorder %s1278_s21, 0 }
  0x3a   : > { %p394_p1 = pnand %p393_p0, %p380_p12 }
  0x3c   : > { %397 = sbr.rel (%p394_p1) target bundleno = 82 (0x52), region = 85 }
  0x41   : > { %vm398_vm1 = vcmask 523264   ;;  %v1293_v9 = vmov 0.0  }
  0x42   : > { %399 = vst.msk [vmem:[%s1682_s5] sm:$0xff] %vm398_vm1, %v1293_v9  ;;  %400 = vst.msk [vmem:[%s1682_s5 + $0x8] sm:$0xff] %vm398_vm1, %v1293_v9 }
  0x43   : > { %401 = vst.msk [vmem:[%s1682_s5 + $0x10] sm:$0xff] %vm398_vm1, %v1293_v9  ;;  %402 = vst.msk [vmem:[%s1682_s5 + $0x18] sm:$0xff] %vm398_vm1, %v1293_v9 }
  0x44   : > { %403 = vst.msk [vmem:[%s1682_s5 + $0x20] sm:$0xff] %vm398_vm1, %v1293_v9  ;;  %404 = vst.msk [vmem:[%s1682_s5 + $0x28] sm:$0xff] %vm398_vm1, %v1293_v9 }
  0x45   : > { %405 = vst.msk [vmem:[%s1682_s5 + $0x30] sm:$0xff] %vm398_vm1, %v1293_v9  ;;  %406 = vst.msk [vmem:[%s1682_s5 + $0x38] sm:$0xff] %vm398_vm1, %v1293_v9 }
  0x46   : > { %407 = vst.msk [vmem:[%s1682_s5 + $0x40] sm:$0xff] %vm398_vm1, %v1293_v9  ;;  %408 = vst.msk [vmem:[%s1682_s5 + $0x48] sm:$0xff] %vm398_vm1, %v1293_v9 }
  0x47   : > { %409 = vst.msk [vmem:[%s1682_s5 + $0x50] sm:$0xff] %vm398_vm1, %v1293_v9  ;;  %410 = vst.msk [vmem:[%s1682_s5 + $0x58] sm:$0xff] %vm398_vm1, %v1293_v9 }
  0x48   : > { %411 = vst.msk [vmem:[%s1682_s5 + $0x60] sm:$0xff] %vm398_vm1, %v1293_v9  ;;  %412 = vst.msk [vmem:[%s1682_s5 + $0x68] sm:$0xff] %vm398_vm1, %v1293_v9 }
  0x49   : > { %413 = vst.msk [vmem:[%s1682_s5 + $0x70] sm:$0xff] %vm398_vm1, %v1293_v9  ;;  %414 = vst.msk [vmem:[%s1682_s5 + $0x78] sm:$0xff] %vm398_vm1, %v1293_v9 }
  0x4a   : > { %415 = vst.msk [vmem:[%s1682_s5 + $0x80] sm:$0xff] %vm398_vm1, %v1293_v9  ;;  %416 = vst.msk [vmem:[%s1682_s5 + $0x88] sm:$0xff] %vm398_vm1, %v1293_v9 }
  0x4b   : > { %417 = vst.msk [vmem:[%s1682_s5 + $0x90] sm:$0xff] %vm398_vm1, %v1293_v9  ;;  %418 = vst.msk [vmem:[%s1682_s5 + $0x98] sm:$0xff] %vm398_vm1, %v1293_v9 }
  0x4c   : > { %419 = vst.msk [vmem:[%s1682_s5 + $0xa0] sm:$0xff] %vm398_vm1, %v1293_v9  ;;  %420 = vst.msk [vmem:[%s1682_s5 + $0xa8] sm:$0xff] %vm398_vm1, %v1293_v9 }
  0x4d   : > { %421 = vst.msk [vmem:[%s1682_s5 + $0xb0] sm:$0xff] %vm398_vm1, %v1293_v9  ;;  %422 = vst.msk [vmem:[%s1682_s5 + $0xb8] sm:$0xff] %vm398_vm1, %v1293_v9 }
  0x4e   : > { %423 = vst.msk [vmem:[%s1682_s5 + $0xc0] sm:$0xff] %vm398_vm1, %v1293_v9  ;;  %424 = vst.msk [vmem:[%s1682_s5 + $0xc8] sm:$0xff] %vm398_vm1, %v1293_v9 }
  0x4f   : > { %425 = vst.msk [vmem:[%s1682_s5 + $0xd0] sm:$0xff] %vm398_vm1, %v1293_v9  ;;  %426 = vst.msk [vmem:[%s1682_s5 + $0xd8] sm:$0xff] %vm398_vm1, %v1293_v9 }
  0x50   : > { %427 = vst.msk [vmem:[%s1682_s5 + $0xe0] sm:$0xff] %vm398_vm1, %v1293_v9  ;;  %428 = vst.msk [vmem:[%s1682_s5 + $0xe8] sm:$0xff] %vm398_vm1, %v1293_v9 }
  0x51   : > { %429 = vst.msk [vmem:[%s1682_s5 + $0xf0] sm:$0xff] %vm398_vm1, %v1293_v9  ;;  %430 = vst.msk [vmem:[%s1682_s5 + $0xf8] sm:$0xff] %vm398_vm1, %v1293_v9 }
  0x52 PF: > { %v1220_v10 = vld [vmem:[%s1411_s7] sm:$0xff]   ;;  %v1221_v11 = vld [vmem:[%s1411_s7 + $0x8] sm:$0xff]   ;;  %v1222_v12 = vld [vmem:[%s1411_s7 + $0x10] sm:$0xff]   ;;  %vm616_vm2 = vcmask 523264   ;;  %p1084_p2 = scmp.ne.s32.totalorder %s1274_s20, 1 }
  0x53   : > { %625 = vxpose.xlu0.c.b16.start [1/4] (short) %v1220_v10, 128  ;;  %1128 = vmatprep.mubr.bf16.mxu0 %v1220_v10  ;;  %v1224_v13 = vld [vmem:[%s1409_s17 + $0x38] sm:$0xff]   ;;  %v1225_v14 = vld [vmem:[%s1409_s17 + $0x30] sm:$0xff]   ;;  %v1227_v16 = vld [vmem:[%s1409_s17 + $0x28] sm:$0xff]  }
  0x54   : > { %1112 = vmatprep.subr.bf16.mxu0 %v1224_v13  ;;  %v1226_v15 = vld [vmem:[%s1394_s9 + $0x18] sm:$0xff]   ;;  %v1228_v17 = vld [vmem:[%s1394_s9 + $0x10] sm:$0xff]   ;;  %v1230_v19 = vld [vmem:[%s1394_s9 + $0x8] sm:$0xff]  }
  0x55   : > { %1113 = vmatpush3.bf16.msra.mxu0 %v1224_v13  ;;  %1136 = vmatprep.subr.bf16.mxu1 %v1226_v15  ;;  %v1223_v18 = vld [vmem:[%s1411_s7 + $0x18] sm:$0xff]   ;;  %v1229_v20 = vld [vmem:[%s1409_s17 + $0x20] sm:$0xff]   ;;  %v1233_v23 = vld [vmem:[%s1409_s17 + $0x10] sm:$0xff]  }
  0x56   : > { %1114 = vmatprep.subr.bf16.mxu0 %v1225_v14  ;;  %1137 = vmatpush3.bf16.msra.mxu1 %v1226_v15  ;;  %v1232_v21 = vld [vmem:[%s1394_s9] sm:$0xff]   ;;  %v1231_v22 = vld [vmem:[%s1409_s17 + $0x18] sm:$0xff]   ;;  %v1234_v24 = vld [vmem:[%s1409_s17 + $0x8] sm:$0xff]   ;;  %s1083_s9 = sshll.u32 %s1274_s20, 7  ;;  %s1294_s20 = smov (!%p1084_p2), 64  }
  0x57   : > { %626 = vxpose.xlu0.c.b16.cont [2/4] (short) %v1221_v11, 128  ;;  %1138 = vmatprep.subr.bf16.mxu1 %v1228_v17  ;;  %v1235_v25 = vld [vmem:[%s1409_s17] sm:$0xff]   ;;  %v465_v34 = vld [vmem:[#allocation2 + $0x10] sm:$0xff]  ;;  %v466_v39 = vld [vmem:[#allocation2 + $0x18] sm:$0xff]  ;;  %s1581_s16 = scalar_lea.vmem %s1682_s5, %s1083_s9 }
  0x58   : > { %v463_v36 = vld [vmem:[#allocation2] sm:$0xff]  ;;  %v464_v42 = vld [vmem:[#allocation2 + $0x8] sm:$0xff]  ;;  %v469_v45 = vld [vmem:[#allocation2 + $0x30] sm:$0xff] }
  0x59   : > { %1115 = vmatpush3.bf16.msra.mxu0 %v1225_v14  ;;  %v467_v48 = vld [vmem:[#allocation2 + $0x20] sm:$0xff]  ;;  %v470_v51 = vld [vmem:[#allocation2 + $0x38] sm:$0xff]  ;;  %v468_v54 = vld [vmem:[#allocation2 + $0x28] sm:$0xff] }
  0x5a   : > { %1116 = vmatprep.subr.bf16.mxu0 %v1227_v16  ;;  %1139 = vmatpush3.bf16.msra.mxu1 %v1228_v17  ;;  %v790_v58 = vld [vmem:[%s1581_s16 + $0x10] sm:$0xff]  ;;  %v788_v60 = vld [vmem:[%s1581_s16] sm:$0xff]  ;;  %v791_v63 = vld [vmem:[%s1581_s16 + $0x18] sm:$0xff] }
  0x5b   : > { %627 = vxpose.xlu0.c.b16.cont [3/4] (short) %v1222_v12, 128  ;;  %1140 = vmatprep.subr.bf16.mxu1 %v1230_v19  ;;  %v789_v2 = vld [vmem:[%s1581_s16 + $0x8] sm:$0xff]  ;;  %v794_v5 = vld [vmem:[%s1581_s16 + $0x30] sm:$0xff]  ;;  %v792_v8 = vld [vmem:[%s1581_s16 + $0x20] sm:$0xff] }
  0x5c   : > { %v793_v14 = vld [vmem:[%s1581_s16 + $0x28] sm:$0xff]  ;;  %v798_v17 = vld [vmem:[%s1581_s16 + $0x50] sm:$0xff] }
  0x5d   : > { %1117 = vmatpush3.bf16.msra.mxu0 %v1227_v16 }
  0x5e   : > { %1118 = vmatprep.subr.bf16.mxu0 %v1229_v20  ;;  %1141 = vmatpush3.bf16.msra.mxu1 %v1230_v19 }
  0x5f   : > { %628 = vxpose.xlu0.c.b16.end [4/4] (short) %v1223_v18, 128  ;;  %1142 = vmatprep.subr.bf16.mxu1 %v1232_v21 }
  0x61   : > { %1119 = vmatpush3.bf16.msra.mxu0 %v1229_v20  ;;  %v796_v20 = vld [vmem:[%s1581_s16 + $0x40] sm:$0xff] }
  0x62   : > { %1120 = vmatprep.subr.bf16.mxu0 %v1231_v22  ;;  %1143 = vmatpush3.bf16.msra.mxu1 %v1232_v21 }
  0x65   : > { %1121 = vmatpush3.bf16.msra.mxu0 %v1231_v22 }
  0x66   : > { %1122 = vmatprep.subr.bf16.mxu0 %v1233_v23 }
  0x69   : > { %1123 = vmatpush3.bf16.msra.mxu0 %v1233_v23  ;;  %v799_v23 = vld [vmem:[%s1581_s16 + $0x58] sm:$0xff] }
  0x6a   : > { %1124 = vmatprep.subr.bf16.mxu0 %v1234_v24 }
  0x6d   : > { %1125 = vmatpush3.bf16.msra.mxu0 %v1234_v24 }
  0x6e   : > { %1126 = vmatprep.subr.bf16.mxu0 %v1235_v25 }
  0x71   : > { %1127 = vmatpush3.bf16.msra.mxu0 %v1235_v25 }
  0x74   : > { %1129 = vmatmul.mubr.bf16.vlgmr.msra.gmra.mxu0 %v1221_v11  ;;  %v795_v11 = vld [vmem:[%s1581_s16 + $0x38] sm:$0xff] }
  0x75   : > { %1132 = vmatprep.mubr.bf16.mxu0 %v1222_v12 }
  0x7c   : > { %1133 = vmatmul.mubr.bf16.gmra.mxu0 %v1223_v18 }
  0xb5   : > { %v633_v26 = vpop.trf.xlu0 }
  0xb6   : > { %1144 = vmatprep.mubr.msk.bf16.mxu1 %vm616_vm2, %v633_v26  ;;  %v797_v26 = vld [vmem:[%s1581_s16 + $0x48] sm:$0xff] }
  0xb9   : > { %v634_v27 = vpop.trf.xlu0 }
  0xba   : > { %1145 = vmatmul.mubr.msk.bf16.vlgmr.msra.gmra.mxu1 %vm616_vm2, %v634_v27 }
  0xbd   : > { %v635_v28 = vpop.trf.xlu0 }
  0xbe   : > { %1148 = vmatprep.mubr.msk.bf16.mxu1 %vm616_vm2, %v635_v28 }
  0xc1   : > { %v636_v29 = vpop.trf.xlu0 }
  0xc2   : > { %1149 = vmatmul.mubr.msk.bf16.gmra.mxu1 %vm616_vm2, %v636_v29  ;;  %v802_v29 = vld [vmem:[%s1581_s16 + $0x70] sm:$0xff] }
  0xc5   : > { %v637_v30 = vpop.trf.xlu0 }
  0xc6   : > { %1152 = vmatprep.mubr.msk.bf16.mxu1 %vm616_vm2, %v637_v30 }
  0xc9   : > { %v638_v31 = vpop.trf.xlu0 }
  0xca   : > { %1153 = vmatmul.mubr.msk.bf16.gmra.mxu1 %vm616_vm2, %v638_v31 }
  0xcd   : > { %v639_v32 = vpop.trf.xlu0 }
  0xce   : > { %1156 = vmatprep.mubr.msk.bf16.mxu1 %vm616_vm2, %v639_v32  ;;  %v800_v32 = vld [vmem:[%s1581_s16 + $0x60] sm:$0xff] }
  0xd1   : > { %v640_v33 = vpop.trf.xlu0 }
  0xd2   : > { %1157 = vmatmul.mubr.msk.bf16.gmra.mxu1 %vm616_vm2, %v640_v33 }
 0x134   : > { %v1130_v35 = vpop.f32.mrf.mxu0 }
 0x135   : > { %v610_v37 = vadd.f32 %v1130_v35, %v465_v34  ;;  %v803_v35 = vld [vmem:[%s1581_s16 + $0x78] sm:$0xff] }
 0x136   : > { %v577_v38 = vpop.f32.mrf.mxu0 }
 0x137   : > { %619 = vst.msk [vmem:[#allocation2 + $0x10] sm:$0xff] %vm616_vm2, %v610_v37  ;;  %v608_v40 = vadd.f32 %v577_v38, %v463_v36  ;;  %v801_v38 = vld [vmem:[%s1581_s16 + $0x68] sm:$0xff] }
 0x138   : > { %v1131_v41 = vpop.f32.mrf.mxu0 }
 0x139   : > { %617 = vst.msk [vmem:[#allocation2] sm:$0xff] %vm616_vm2, %v608_v40  ;;  %v611_v43 = vadd.f32 %v1131_v41, %v466_v39 }
 0x13a   : > { %v580_v44 = vpop.f32.mrf.mxu0 }
 0x13b   : > { %620 = vst.msk [vmem:[#allocation2 + $0x18] sm:$0xff] %vm616_vm2, %v611_v43  ;;  %v609_v46 = vadd.f32 %v580_v44, %v464_v42 }
 0x13c   : > { %v1134_v47 = vpop.f32.mrf.mxu0 }
 0x13d   : > { %618 = vst.msk [vmem:[#allocation2 + $0x8] sm:$0xff] %vm616_vm2, %v609_v46  ;;  %v614_v49 = vadd.f32 %v1134_v47, %v469_v45 }
 0x13e   : > { %v593_v50 = vpop.f32.mrf.mxu0 }
 0x13f   : > { %623 = vst.msk [vmem:[#allocation2 + $0x30] sm:$0xff] %vm616_vm2, %v614_v49  ;;  %v612_v52 = vadd.f32 %v593_v50, %v467_v48 }
 0x140   : > { %v1135_v53 = vpop.f32.mrf.mxu0 }
 0x141   : > { %621 = vst.msk [vmem:[#allocation2 + $0x20] sm:$0xff] %vm616_vm2, %v612_v52  ;;  %v615_v55 = vadd.f32 %v1135_v53, %v470_v51 }
 0x142   : > { %v596_v56 = vpop.f32.mrf.mxu0 }
 0x143   : > { %624 = vst.msk [vmem:[#allocation2 + $0x38] sm:$0xff] %vm616_vm2, %v615_v55  ;;  %v613_v57 = vadd.f32 %v596_v56, %v468_v54 }
 0x145   : > { %622 = vst.msk [vmem:[#allocation2 + $0x28] sm:$0xff] %vm616_vm2, %v613_v57 }
 0x17a   : > { %v1146_v59 = vpop.f32.mrf.mxu1 }
 0x17b   : > { %v806_v61 = vadd.f32 %v1146_v59, %v790_v58 }
 0x17c   : > { %v723_v62 = vpop.f32.mrf.mxu1 }
 0x17d   : > { %822 = vst.msk [vmem:[%s1581_s16 + $0x10] sm:$0xff] %vm616_vm2, %v806_v61  ;;  %v804_v0 = vadd.f32 %v788_v60, %v723_v62 }
 0x17e   : > { %v1147_v1 = vpop.f32.mrf.mxu1 }
 0x17f   : > { %820 = vst.msk [vmem:[%s1581_s16] sm:$0xff] %vm616_vm2, %v804_v0  ;;  %v807_v3 = vadd.f32 %v1147_v1, %v791_v63 }
 0x180   : > { %v726_v4 = vpop.f32.mrf.mxu1 }
 0x181   : > { %823 = vst.msk [vmem:[%s1581_s16 + $0x18] sm:$0xff] %vm616_vm2, %v807_v3  ;;  %v805_v6 = vadd.f32 %v789_v2, %v726_v4 }
 0x182   : > { %v1150_v7 = vpop.f32.mrf.mxu1 }
 0x183   : > { %821 = vst.msk [vmem:[%s1581_s16 + $0x8] sm:$0xff] %vm616_vm2, %v805_v6  ;;  %v810_v9 = vadd.f32 %v1150_v7, %v794_v5 }
 0x184   : > { %v739_v10 = vpop.f32.mrf.mxu1 }
 0x185   : > { %826 = vst.msk [vmem:[%s1581_s16 + $0x30] sm:$0xff] %vm616_vm2, %v810_v9  ;;  %v808_v12 = vadd.f32 %v792_v8, %v739_v10 }
 0x186   : > { %v1151_v13 = vpop.f32.mrf.mxu1 }
 0x187   : > { %824 = vst.msk [vmem:[%s1581_s16 + $0x20] sm:$0xff] %vm616_vm2, %v808_v12  ;;  %v811_v15 = vadd.f32 %v1151_v13, %v795_v11 }
 0x188   : > { %v742_v16 = vpop.f32.mrf.mxu1 }
 0x189   : > { %827 = vst.msk [vmem:[%s1581_s16 + $0x38] sm:$0xff] %vm616_vm2, %v811_v15  ;;  %v809_v18 = vadd.f32 %v793_v14, %v742_v16 }
 0x18a   : > { %v1154_v19 = vpop.f32.mrf.mxu1 }
 0x18b   : > { %825 = vst.msk [vmem:[%s1581_s16 + $0x28] sm:$0xff] %vm616_vm2, %v809_v18  ;;  %v814_v21 = vadd.f32 %v1154_v19, %v798_v17 }
 0x18c   : > { %v755_v22 = vpop.f32.mrf.mxu1 }
 0x18d   : > { %830 = vst.msk [vmem:[%s1581_s16 + $0x50] sm:$0xff] %vm616_vm2, %v814_v21  ;;  %v812_v24 = vadd.f32 %v796_v20, %v755_v22 }
 0x18e   : > { %v1155_v25 = vpop.f32.mrf.mxu1 }
 0x18f   : > { %828 = vst.msk [vmem:[%s1581_s16 + $0x40] sm:$0xff] %vm616_vm2, %v812_v24  ;;  %v815_v27 = vadd.f32 %v1155_v25, %v799_v23 }
 0x190   : > { %v758_v28 = vpop.f32.mrf.mxu1 }
 0x191   : > { %831 = vst.msk [vmem:[%s1581_s16 + $0x58] sm:$0xff] %vm616_vm2, %v815_v27  ;;  %v813_v30 = vadd.f32 %v797_v26, %v758_v28 }
 0x192   : > { %v1158_v31 = vpop.f32.mrf.mxu1 }
 0x193   : > { %829 = vst.msk [vmem:[%s1581_s16 + $0x48] sm:$0xff] %vm616_vm2, %v813_v30  ;;  %v818_v33 = vadd.f32 %v1158_v31, %v802_v29 }
 0x194   : > { %v771_v34 = vpop.f32.mrf.mxu1 }
 0x195   : > { %834 = vst.msk [vmem:[%s1581_s16 + $0x70] sm:$0xff] %vm616_vm2, %v818_v33  ;;  %v816_v36 = vadd.f32 %v800_v32, %v771_v34 }
 0x196   : > { %v1159_v37 = vpop.f32.mrf.mxu1 }
 0x197   : > { %832 = vst.msk [vmem:[%s1581_s16 + $0x60] sm:$0xff] %vm616_vm2, %v816_v36  ;;  %v819_v39 = vadd.f32 %v1159_v37, %v803_v35  ;;  %839 = sbr.rel (%p1084_p2) target bundleno = 547 (0x223), region = 89 }
 0x198   : > { %v774_v40 = vpop.f32.mrf.mxu1 }
 0x199   : > { %835 = vst.msk [vmem:[%s1581_s16 + $0x78] sm:$0xff] %vm616_vm2, %v819_v39  ;;  %v817_v41 = vadd.f32 %v801_v38, %v774_v40 }
 0x19b   : > { %833 = vst.msk [vmem:[%s1581_s16 + $0x68] sm:$0xff] %vm616_vm2, %v817_v41 }
 0x19c   : > { %v842_v42 = vld [vmem:[#allocation2 + $0x10] sm:$0xff]  ;;  %v840_v44 = vld [vmem:[#allocation2] sm:$0xff]  ;;  %v843_v47 = vld [vmem:[#allocation2 + $0x18] sm:$0xff] }
 0x19d   : > { %v850_v43 = vld [vmem:[%s1399_s12 + $0x10] sm:$0xff]  ;;  %v848_v46 = vld [vmem:[%s1399_s12] sm:$0xff]  ;;  %v851_v48 = vld [vmem:[%s1399_s12 + $0x18] sm:$0xff] }
 0x19e   : > { %v858_v45 = vadd.f32 %v850_v43, %v842_v42  ;;  %v856_v49 = vadd.f32 %v848_v46, %v840_v44  ;;  %v859_v50 = vadd.f32 %v851_v48, %v843_v47  ;;  %v841_v51 = vld [vmem:[#allocation2 + $0x8] sm:$0xff]  ;;  %v844_v57 = vld [vmem:[#allocation2 + $0x20] sm:$0xff]  ;;  %v847_v0 = vld [vmem:[#allocation2 + $0x38] sm:$0xff] }
 0x19f   : > { %v849_v52 = vld [vmem:[%s1399_s12 + $0x8] sm:$0xff]  ;;  %v852_v58 = vld [vmem:[%s1399_s12 + $0x20] sm:$0xff]  ;;  %v855_v1 = vld [vmem:[%s1399_s12 + $0x38] sm:$0xff] }
 0x1a0   : > { %v845_v53 = vld [vmem:[#allocation2 + $0x28] sm:$0xff]  ;;  %v866_v54 = vmul.f32 0.33333334, %v858_v45  ;;  %v857_v55 = vadd.f32 %v849_v52, %v841_v51  ;;  %v864_v59 = vmul.f32 0.33333334, %v856_v49  ;;  %v860_v63 = vadd.f32 %v852_v58, %v844_v57  ;;  %v846_v2 = vld [vmem:[#allocation2 + $0x30] sm:$0xff] }
 0x1a1   : > { %v853_v56 = vld [vmem:[%s1399_s12 + $0x28] sm:$0xff]  ;;  %v867_v60 = vmul.f32 0.33333334, %v859_v50  ;;  %v854_v3 = vld [vmem:[%s1399_s12 + $0x30] sm:$0xff]  ;;  %v863_v5 = vadd.f32 %v855_v1, %v847_v0 }
 0x1a2   : > { %884 = vrot.lane.b32.xlu1 %v866_v54, %s1294_s20  ;;  %v861_v61 = vadd.f32 %v853_v56, %v845_v53  ;;  %880 = vrot.lane.b32.xlu0 %v864_v59, %s1294_s20  ;;  %v865_v62 = vmul.f32 0.33333334, %v857_v55  ;;  %v868_v6 = vmul.f32 0.33333334, %v860_v63  ;;  %v862_v7 = vadd.f32 %v854_v3, %v846_v2 }
 0x1a3   : > { %v871_v8 = vmul.f32 0.33333334, %v863_v5 }
 0x1a4   : > { %v869_v4 = vmul.f32 0.33333334, %v861_v61  ;;  %v870_v9 = vmul.f32 0.33333334, %v862_v7 }
 0x1a6   : > { %886 = vrot.lane.b32.xlu1 %v867_v60, %s1294_s20  ;;  %882 = vrot.lane.b32.xlu0 %v865_v62, %s1294_s20 }
 0x1aa   : > { %890 = vrot.lane.b32.xlu1 %v869_v4, %s1294_s20  ;;  %888 = vrot.lane.b32.xlu0 %v868_v6, %s1294_s20 }
 0x1ae   : > { %894 = vrot.lane.b32.xlu1 %v871_v8, %s1294_s20  ;;  %892 = vrot.lane.b32.xlu0 %v870_v9, %s1294_s20 }
 0x214   : > { %v885_v10 = vpop.permute.xlu1 %884  ;;  %v881_v12 = vpop.permute.xlu0 %880 }
 0x215   : > { %v906_v11 = vsel %vm616_vm2, %v842_v42, %v885_v10  ;;  %v904_v13 = vsel %vm616_vm2, %v840_v44, %v881_v12 }
 0x216   : > { %914 = vst [vmem:[%s1404_s14 + $0x10] sm:$0xff] %v906_v11  ;;  %912 = vst [vmem:[%s1404_s14] sm:$0xff] %v904_v13 }
 0x218   : > { %v887_v14 = vpop.permute.xlu1 %886  ;;  %v883_v16 = vpop.permute.xlu0 %882 }
 0x219   : > { %v907_v15 = vsel %vm616_vm2, %v843_v47, %v887_v14  ;;  %v905_v17 = vsel %vm616_vm2, %v841_v51, %v883_v16 }
 0x21a   : > { %915 = vst [vmem:[%s1404_s14 + $0x18] sm:$0xff] %v907_v15  ;;  %913 = vst [vmem:[%s1404_s14 + $0x8] sm:$0xff] %v905_v17 }
 0x21c   : > { %v891_v18 = vpop.permute.xlu1 %890  ;;  %v889_v20 = vpop.permute.xlu0 %888 }
 0x21d   : > { %v909_v19 = vsel %vm616_vm2, %v845_v53, %v891_v18  ;;  %v908_v21 = vsel %vm616_vm2, %v844_v57, %v889_v20 }
 0x21e   : > { %917 = vst [vmem:[%s1404_s14 + $0x28] sm:$0xff] %v909_v19  ;;  %916 = vst [vmem:[%s1404_s14 + $0x20] sm:$0xff] %v908_v21 }
 0x220   : > { %v895_v22 = vpop.permute.xlu1 %894  ;;  %v893_v24 = vpop.permute.xlu0 %892 }
 0x221   : > { %v911_v23 = vsel %vm616_vm2, %v847_v0, %v895_v22  ;;  %v910_v25 = vsel %vm616_vm2, %v846_v2, %v893_v24 }
 0x222   : > { %919 = vst [vmem:[%s1404_s14 + $0x38] sm:$0xff] %v911_v23  ;;  %918 = vst [vmem:[%s1404_s14 + $0x30] sm:$0xff] %v910_v25 }
 0x223 PF: > { %s16_s24 = sadd.s32 1, %s1290_s24   ;;  %s1685_s18 = smov %s1270_s19 }
 0x224   : > { %p13_p3 = scmp.ge.s32.totalorder %s16_s24, 6   ;;  %s1686_s19 = smov %s1376_s6 }
 0x225   : > { %s1687_s20 = smov %s1282_s22  ;;  %s1688_s21 = smov %s1286_s23 }
 0x226   : > { %s1689_s22 = smov %s1692_s25  ;;  %s1690_s23 = smov %s1696_s26 }
 0x227   :  { %15 = sbr.rel (!%p13_p3) target bundleno = 6 (0x6), region = 142 }

</bundles_post_ra>
